<compile_context>
chip_gen: v7x
topology: tpu7x:2x2x1
jax: 0.10.0
libtpu: 0.0.40
codegen_flags: <defaults>
</compile_context>

<pallas_src>
import functools

import jax
import jax.numpy as jnp
import numpy as np
from jax import lax
from jax.experimental import pallas as pl
from jax.experimental.pallas import tpu as pltpu

LEAKY_SLOPE = 0.01   # nn.LeakyReLU default
BN_EPS = 1e-5        # nn.BatchNorm2d default
K7 = 7               # convmix branches (1/3/5/7) fused into one 7x7 kernel


# ------------------------------ static geometry ------------------------------

def _geometry(H, W, K=K7):
    pad = K // 2
    Hh, Wh = H // 2, W // 2
    Wp = ((Wh + 2 * pad + 7) // 8) * 8                     # padded row width (mult of 8)
    L = Hh * Wp                                            # flattened full-width conv domain
    front = pad * (Wp + 1)                                 # flat index of padded pixel (0, 0)
    CAN = ((L + 2 * pad * (Wp + 1) + 127) // 128) * 128    # canvas length, lane-rounded
    Q = H * W                                              # upsampled spatial size
    return pad, Hh, Wh, Wp, L, front, CAN, Q


def _build_static_selectors(H, W, K=K7):
    """Host-side (numpy) 0/1 selection constants: built once, VMEM-resident in the kernel."""
    pad, Hh, Wh, Wp, L, front, CAN, Q = _geometry(H, W, K)
    ii, jj = np.meshgrid(np.arange(Hh), np.arange(Wh), indexing="ij")
    ii, jj = ii.ravel(), jj.ravel()

    # pooled pixel (i, j): flat input index 2i*W + 2j  ->  canvas index front + i*Wp + j
    g_pool = np.zeros((H * W, CAN), np.float32)
    g_pool[2 * ii * W + 2 * jj, front + ii * Wp + jj] = 1.0

    # validity mask over the full-width conv domain (columns j >= Wh are garbage)
    vmask = np.zeros((1, L), np.float32)
    for i in range(Hh):
        vmask[0, i * Wp:i * Wp + Wh] = 1.0

    # ConvTranspose2d(k=2, s=2): 2x2 sub-pixel interleave + NCHW flatten, 4 taps stacked
    # on the contraction axis (row index = k*L + i*Wp + j, k = kh*2 + kw).
    sel = np.zeros((4 * L, Q), np.float32)
    for k in range(4):
        kh, kw = k // 2, k % 2
        sel[k * L + ii * Wp + jj, (2 * ii + kh) * W + (2 * jj + kw)] = 1.0

    return jnp.asarray(g_pool), jnp.asarray(vmask), jnp.asarray(sel)


# ------------------------------- fused kernel --------------------------------

def _ublock_mid_kernel(x_ref, gp_ref, vm_ref, sel_ref,
                       w1_ref, b1_ref, w2_ref, b2_ref, wt_ref, bt_ref,
                       o_ref, *, W, Wp, front, K):
    f32 = jnp.float32
    CAN = gp_ref.shape[1]
    L = vm_ref.shape[1]
    C1 = w1_ref.shape[0]

    # ---------------- MaxPool2d(2): lane-dense flat shift-and-max ----------------
    x = x_ref[0]                                     # (Cin, H*W), lane-dense
    xw = jnp.maximum(x, jnp.roll(x, -1, axis=1))     # pair max along w (valid at even w)
    xm = jnp.maximum(xw, jnp.roll(xw, -W, axis=1))   # pair max along h (valid at even h)
    # (wrapped values only land on odd rows/cols, which the even-pixel scatter discards)

    # Scatter the pooled even pixels into the zero-padded flat canvas: one matmul with the
    # hoisted constant g_pool (no per-step iota/mask building).
    canvas1 = jnp.dot(xm, gp_ref[...], preferred_element_type=f32)    # (Cin, CAN)

    # -------- convmix (7x7, eval-BN folded) + LeakyReLU: ONE im2col matmul --------
    def convmix(canvas, w_ref_, b_ref_):
        band = jnp.concatenate(
            [canvas[:, kh * Wp + kw: kh * Wp + kw + L]
             for kh in range(K) for kw in range(K)], axis=0)          # (K*K*C_in, L)
        h = jnp.dot(w_ref_[...], band, preferred_element_type=f32) + b_ref_[...]
        return jnp.where(h >= 0, h, LEAKY_SLOPE * h)                  # LeakyReLU

    # TODO(synk): BatchNorm2d is applied in eval mode (running stats folded into the conv
    # weights/bias); training-mode batch statistics are not reproduced.
    h1 = convmix(canvas1, w1_ref, b1_ref)                             # (C1, L)

    # Re-embed into a fresh padded canvas WITHOUT a matmul: mask garbage columns, then
    # concat zero borders (replaces the old (C1,L)x(L,CAN) g_embed matmul).
    h1m = h1 * vm_ref[...]
    canvas2 = jnp.concatenate(
        [jnp.zeros((C1, front), f32), h1m,
         jnp.zeros((C1, CAN - front - L), f32)], axis=1)              # (C1, CAN)
    h2 = convmix(canvas2, w2_ref, b2_ref)                             # (C2, L)

    # -------- ConvTranspose2d(C2 -> Cout, k=2, s=2): fused taps, one interleave matmul ----
    y_all = jnp.concatenate(
        [jnp.dot(wt_ref[k], h2, preferred_element_type=f32) for k in range(4)],
        axis=1)                                                       # (Cout, 4L)
    out = jnp.dot(y_all, sel_ref[...], preferred_element_type=f32) + bt_ref[...]
    o_ref[0] = out.astype(o_ref.dtype)                                # lane-dense (Cout, H*W)


# ------------------------------ forward wrapper -------------------------------

def ublock_mid_forward(x_nchw, kp):
    """x: NCHW. kp: kernel-format params from prepare_kernel_params()."""
    N, Cin, H, W = x_nchw.shape
    assert H % 2 == 0 and W % 2 == 0, "MaxPool2d(2) path requires even H and W"
    pad, Hh, Wh, Wp, L, front, CAN, Q = _geometry(H, W, K7)
    assert Wh + 2 * pad <= Wp
    Cout = kp['wtk'].shape[1]

    g_pool, vmask, sel = _build_static_selectors(H, W, K7)   # host-built constants
    x_flat = x_nchw.reshape(N, Cin, H * W)                   # lane-dense input (free reshape)

    kernel = functools.partial(_ublock_mid_kernel, W=W, Wp=Wp, front=front, K=K7)
    const = lambda n: (0, 0)   # constant block index -> fetched once, stays VMEM-resident

    out_flat = pl.pallas_call(
        kernel,
        out_shape=jax.ShapeDtypeStruct((N, Cout, Q), x_nchw.dtype),
        grid=(N,),
        in_specs=[
            pl.BlockSpec((1, Cin, H * W), lambda n: (n, 0, 0)),
            pl.BlockSpec(g_pool.shape, const),
            pl.BlockSpec(vmask.shape, const),
            pl.BlockSpec(sel.shape, const),
            pl.BlockSpec(kp['w1k'].shape, const),
            pl.BlockSpec(kp['b1k'].shape, const),
            pl.BlockSpec(kp['w2k'].shape, const),
            pl.BlockSpec(kp['b2k'].shape, const),
            pl.BlockSpec(kp['wtk'].shape, lambda n: (0, 0, 0)),
            pl.BlockSpec(kp['btk'].shape, const),
        ],
        out_specs=pl.BlockSpec((1, Cout, Q), lambda n: (n, 0, 0)),
        compiler_params=pltpu.CompilerParams(
            dimension_semantics=("parallel",),        # batch axis -> both TCs on v7x (N>=2)
            vmem_limit_bytes=32 * 1024 * 1024),
    )(x_flat, g_pool, vmask, sel,
      kp['w1k'], kp['b1k'], kp['w2k'], kp['b2k'], kp['wtk'], kp['btk'])
    # Kernel produced NCHW channel planes flattened on the lane axis -> free reshape.
    return out_flat.reshape(N, Cout, H, W)


# --------------------------- parameter construction --------------------------

def make_convmix_params(key, cin, cout):
    """Fuse conv1/conv3/conv5/conv7 (each cin -> cout//4) into one 7x7 HWIO weight."""
    a = cout // 4
    keys = jax.random.split(key, 8)
    w_full = jnp.zeros((7, 7, cin, cout), jnp.float32)
    biases = []
    for i, k in enumerate((1, 3, 5, 7)):
        wk = 0.1 * jax.random.normal(keys[2 * i], (k, k, cin, a), jnp.float32)
        bk = 0.1 * jax.random.normal(keys[2 * i + 1], (a,), jnp.float32)
        off = (7 - k) // 2
        w_full = w_full.at[off:off + k, off:off + k, :, i * a:(i + 1) * a].set(wk)
        biases.append(bk)
    return w_full, jnp.concatenate(biases)


def make_bn_params(key, c):
    k1, k2, k3, k4 = jax.random.split(key, 4)
    gamma = 1.0 + 0.1 * jax.random.normal(k1, (c,), jnp.float32)
    beta = 0.1 * jax.random.normal(k2, (c,), jnp.float32)
    mean = 0.1 * jax.random.normal(k3, (c,), jnp.float32)
    var = jnp.abs(jax.random.normal(k4, (c,), jnp.float32)) + 0.5
    scale = gamma / jnp.sqrt(var + BN_EPS)
    shift = beta - mean * scale
    return scale, shift


def make_ublock_mid_params(key, idim, odim):
    k = jax.random.split(key, 6)
    w1, b1 = make_convmix_params(k[0], idim, odim)
    s1, t1 = make_bn_params(k[1], odim)
    w2, b2 = make_convmix_params(k[2], odim, odim)
    s2, t2 = make_bn_params(k[3], odim)
    # ConvTranspose2d(odim, odim//2, 2, 2): stored here as HWIO (2, 2, odim, odim//2)
    wt = 0.1 * jax.random.normal(k[4], (2, 2, odim, odim // 2), jnp.float32)
    bt = 0.1 * jax.random.normal(k[5], (odim // 2,), jnp.float32)
    return dict(w1=w1, b1=b1, s1=s1, t1=t1, w2=w2, b2=b2, s2=s2, t2=t2, wt=wt, bt=bt)


def prepare_kernel_params(p):
    """Fold eval-mode BatchNorm into the conv weights/bias and repack into kernel layouts."""
    K, _, Cin, C1 = p['w1'].shape
    C2 = p['w2'].shape[-1]
    Cout = p['wt'].shape[-1]
    w1e = p['w1'] * p['s1']
    b1e = (p['b1'] * p['s1'] + p['t1']).reshape(C1, 1)
    w2e = p['w2'] * p['s2']
    b2e = (p['b2'] * p['s2'] + p['t2']).reshape(C2, 1)
    # (kh, kw, cin, cout) -> (cout, kh*kw*cin): matches the in-kernel im2col band order.
    w1k = jnp.transpose(w1e, (3, 0, 1, 2)).reshape(C1, K * K * Cin)
    w2k = jnp.transpose(w2e, (3, 0, 1, 2)).reshape(C2, K * K * C1)
    # ConvTranspose2d weight (2, 2, C2, Cout) -> (kh*2+kw, Cout, C2)
    wtk = jnp.transpose(p['wt'], (0, 1, 3, 2)).reshape(4, Cout, C2)
    btk = p['bt'].reshape(Cout, 1)
    return dict(w1k=w1k, b1k=b1e, w2k=w2k, b2k=b2e, wtk=wtk, btk=btk)


# ------------------------------ pure-JAX reference ---------------------------

def ublock_mid_reference(x_nchw, p):
    x = jnp.transpose(x_nchw, (0, 2, 3, 1))
    N, H, W, C = x.shape
    x = jnp.max(x.reshape(N, H // 2, 2, W // 2, 2, C), axis=(2, 4))

    def cmix(x, w, b, s, t):
        y = lax.conv_general_dilated(
            x, w, window_strides=(1, 1), padding=((3, 3), (3, 3)),
            dimension_numbers=('NHWC', 'HWIO', 'NHWC'))
        y = y + b
        y = y * s + t
        return jnp.where(y >= 0, y, LEAKY_SLOPE * y)

    x = cmix(x, p['w1'], p['b1'], p['s1'], p['t1'])
    x = cmix(x, p['w2'], p['b2'], p['s2'], p['t2'])

    N, H2, W2, Cin = x.shape
    Cout = p['wt'].shape[-1]
    y = jnp.einsum('nijc,klcd->nklijd', x, p['wt'])
    y = jnp.transpose(y, (0, 3, 1, 4, 2, 5)).reshape(N, 2 * H2, 2 * W2, Cout) + p['bt']
    return jnp.transpose(y, (0, 3, 1, 2))


# ------------------------------------ main ------------------------------------

if __name__ == "__main__":
    key = jax.random.PRNGKey(0)
    key_x, key_p = jax.random.split(key)

    N, IDIM, ODIM, H, W = 2, 4, 8, 16, 16            # Ublock(idim=4, odim=8, st='mid')
    x = jax.random.normal(key_x, (N, IDIM, H, W), jnp.float32)   # PyTorch NCHW input
    params = make_ublock_mid_params(key_p, IDIM, ODIM)
    kparams = prepare_kernel_params(params)           # BN folded, kernel layouts

    fwd = jax.jit(ublock_mid_forward)
    out = jax.block_until_ready(fwd(x, kparams))
    assert out.shape == (N, ODIM // 2, H, W), out.shape

    ref = jax.block_until_ready(ublock_mid_reference(x, params))
    max_err = float(jnp.max(jnp.abs(out - ref)))
    assert max_err < 1e-3, f"mismatch vs reference: {max_err}"

    print("KERNEL_OK")
</pallas_src>

<mosaic_0001>
module attributes {stable_mosaic.version = 11 : i64} {
  func.func @_ublock_mid_kernel(%arg0: i32, %arg1: memref<1x4x256xf32, #tpu.memory_space<vmem>>, %arg2: memref<256x256xf32, #tpu.memory_space<vmem>>, %arg3: memref<1x128xf32, #tpu.memory_space<vmem>>, %arg4: memref<512x256xf32, #tpu.memory_space<vmem>>, %arg5: memref<8x196xf32, #tpu.memory_space<vmem>>, %arg6: memref<8x1xf32, #tpu.memory_space<vmem>>, %arg7: memref<8x392xf32, #tpu.memory_space<vmem>>, %arg8: memref<8x1xf32, #tpu.memory_space<vmem>>, %arg9: memref<4x4x8xf32, #tpu.memory_space<vmem>>, %arg10: memref<4x1xf32, #tpu.memory_space<vmem>>, %arg11: memref<1x4x256xf32, #tpu.memory_space<vmem>>) attributes {dimension_semantics = [#tpu.dimension_semantics<parallel>], iteration_bounds = array<i64: 2>, scalar_prefetch = 0 : i64, scratch_operands = 0 : i64, tpu.core_type = #tpu.core_type<tc>, window_params = [{transform_indices = @transform_0, window_bounds = array<i64: 1, 4, 256>}, {pipeline_mode = #tpu.pipeline_mode<synchronous>, transform_indices = @transform_1, window_bounds = array<i64: 256, 256>}, {pipeline_mode = #tpu.pipeline_mode<synchronous>, transform_indices = @transform_2, window_bounds = array<i64: 1, 128>}, {pipeline_mode = #tpu.pipeline_mode<synchronous>, transform_indices = @transform_3, window_bounds = array<i64: 512, 256>}, {pipeline_mode = #tpu.pipeline_mode<synchronous>, transform_indices = @transform_4, window_bounds = array<i64: 8, 196>}, {pipeline_mode = #tpu.pipeline_mode<synchronous>, transform_indices = @transform_5, window_bounds = array<i64: 8, 1>}, {pipeline_mode = #tpu.pipeline_mode<synchronous>, transform_indices = @transform_6, window_bounds = array<i64: 8, 392>}, {pipeline_mode = #tpu.pipeline_mode<synchronous>, transform_indices = @transform_7, window_bounds = array<i64: 8, 1>}, {pipeline_mode = #tpu.pipeline_mode<synchronous>, transform_indices = @transform_8, window_bounds = array<i64: 4, 4, 8>}, {pipeline_mode = #tpu.pipeline_mode<synchronous>, transform_indices = @transform_9, window_bounds = array<i64: 4, 1>}, {transform_indices = @transform_10, window_bounds = array<i64: 1, 4, 256>}]} {
    %c0 = arith.constant 0 : index
    %c0_0 = arith.constant 0 : index
    %c0_1 = arith.constant 0 : index
    %0 = vector.load %arg1[%c0, %c0_0, %c0_1] : memref<1x4x256xf32, #tpu.memory_space<vmem>>, vector<1x4x256xf32>
    %1 = vector.shape_cast %0 : vector<1x4x256xf32> to vector<4x256xf32>
    %2 = vector.extract_strided_slice %1 {offsets = [0, 1], sizes = [4, 255], strides = [1, 1]} : vector<4x256xf32> to vector<4x255xf32>
    %3 = vector.extract_strided_slice %1 {offsets = [0, 0], sizes = [4, 1], strides = [1, 1]} : vector<4x256xf32> to vector<4x1xf32>
    %4 = tpu.concatenate %2, %3 in 1 : vector<4x255xf32>, vector<4x1xf32> -> vector<4x256xf32>
    %5 = arith.maximumf %1, %4 : vector<4x256xf32>
    %6 = vector.extract_strided_slice %5 {offsets = [0, 16], sizes = [4, 240], strides = [1, 1]} : vector<4x256xf32> to vector<4x240xf32>
    %7 = vector.extract_strided_slice %5 {offsets = [0, 0], sizes = [4, 16], strides = [1, 1]} : vector<4x256xf32> to vector<4x16xf32>
    %8 = tpu.concatenate %6, %7 in 1 : vector<4x240xf32>, vector<4x16xf32> -> vector<4x256xf32>
    %9 = arith.maximumf %5, %8 : vector<4x256xf32>
    %c0_2 = arith.constant 0 : index
    %c0_3 = arith.constant 0 : index
    %10 = vector.load %arg2[%c0_2, %c0_3] : memref<256x256xf32, #tpu.memory_space<vmem>>, vector<256x256xf32>
    %cst = arith.constant dense<0.000000e+00> : vector<4x256xf32>
    %11 = tpu.matmul %9, %10, %cst {dimension_numbers = #tpu.dot_dimension_numbers<[1], [0], [0], [1], [0, 0, 1, 1], [], []>} : vector<4x256xf32>, vector<256x256xf32>, vector<4x256xf32> -> vector<4x256xf32>
    %12 = vector.extract_strided_slice %11 {offsets = [0, 0], sizes = [4, 128], strides = [1, 1]} : vector<4x256xf32> to vector<4x128xf32>
    %13 = vector.extract_strided_slice %11 {offsets = [0, 1], sizes = [4, 128], strides = [1, 1]} : vector<4x256xf32> to vector<4x128xf32>
    %14 = vector.extract_strided_slice %11 {offsets = [0, 2], sizes = [4, 128], strides = [1, 1]} : vector<4x256xf32> to vector<4x128xf32>
    %15 = vector.extract_strided_slice %11 {offsets = [0, 3], sizes = [4, 128], strides = [1, 1]} : vector<4x256xf32> to vector<4x128xf32>
    %16 = vector.extract_strided_slice %11 {offsets = [0, 4], sizes = [4, 128], strides = [1, 1]} : vector<4x256xf32> to vector<4x128xf32>
    %17 = vector.extract_strided_slice %11 {offsets = [0, 5], sizes = [4, 128], strides = [1, 1]} : vector<4x256xf32> to vector<4x128xf32>
    %18 = vector.extract_strided_slice %11 {offsets = [0, 6], sizes = [4, 128], strides = [1, 1]} : vector<4x256xf32> to vector<4x128xf32>
    %19 = vector.extract_strided_slice %11 {offsets = [0, 16], sizes = [4, 128], strides = [1, 1]} : vector<4x256xf32> to vector<4x128xf32>
    %20 = vector.extract_strided_slice %11 {offsets = [0, 17], sizes = [4, 128], strides = [1, 1]} : vector<4x256xf32> to vector<4x128xf32>
    %21 = vector.extract_strided_slice %11 {offsets = [0, 18], sizes = [4, 128], strides = [1, 1]} : vector<4x256xf32> to vector<4x128xf32>
    %22 = vector.extract_strided_slice %11 {offsets = [0, 19], sizes = [4, 128], strides = [1, 1]} : vector<4x256xf32> to vector<4x128xf32>
    %23 = vector.extract_strided_slice %11 {offsets = [0, 20], sizes = [4, 128], strides = [1, 1]} : vector<4x256xf32> to vector<4x128xf32>
    %24 = vector.extract_strided_slice %11 {offsets = [0, 21], sizes = [4, 128], strides = [1, 1]} : vector<4x256xf32> to vector<4x128xf32>
    %25 = vector.extract_strided_slice %11 {offsets = [0, 22], sizes = [4, 128], strides = [1, 1]} : vector<4x256xf32> to vector<4x128xf32>
    %26 = vector.extract_strided_slice %11 {offsets = [0, 32], sizes = [4, 128], strides = [1, 1]} : vector<4x256xf32> to vector<4x128xf32>
    %27 = vector.extract_strided_slice %11 {offsets = [0, 33], sizes = [4, 128], strides = [1, 1]} : vector<4x256xf32> to vector<4x128xf32>
    %28 = vector.extract_strided_slice %11 {offsets = [0, 34], sizes = [4, 128], strides = [1, 1]} : vector<4x256xf32> to vector<4x128xf32>
    %29 = vector.extract_strided_slice %11 {offsets = [0, 35], sizes = [4, 128], strides = [1, 1]} : vector<4x256xf32> to vector<4x128xf32>
    %30 = vector.extract_strided_slice %11 {offsets = [0, 36], sizes = [4, 128], strides = [1, 1]} : vector<4x256xf32> to vector<4x128xf32>
    %31 = vector.extract_strided_slice %11 {offsets = [0, 37], sizes = [4, 128], strides = [1, 1]} : vector<4x256xf32> to vector<4x128xf32>
    %32 = vector.extract_strided_slice %11 {offsets = [0, 38], sizes = [4, 128], strides = [1, 1]} : vector<4x256xf32> to vector<4x128xf32>
    %33 = vector.extract_strided_slice %11 {offsets = [0, 48], sizes = [4, 128], strides = [1, 1]} : vector<4x256xf32> to vector<4x128xf32>
    %34 = vector.extract_strided_slice %11 {offsets = [0, 49], sizes = [4, 128], strides = [1, 1]} : vector<4x256xf32> to vector<4x128xf32>
    %35 = vector.extract_strided_slice %11 {offsets = [0, 50], sizes = [4, 128], strides = [1, 1]} : vector<4x256xf32> to vector<4x128xf32>
    %36 = vector.extract_strided_slice %11 {offsets = [0, 51], sizes = [4, 128], strides = [1, 1]} : vector<4x256xf32> to vector<4x128xf32>
    %37 = vector.extract_strided_slice %11 {offsets = [0, 52], sizes = [4, 128], strides = [1, 1]} : vector<4x256xf32> to vector<4x128xf32>
    %38 = vector.extract_strided_slice %11 {offsets = [0, 53], sizes = [4, 128], strides = [1, 1]} : vector<4x256xf32> to vector<4x128xf32>
    %39 = vector.extract_strided_slice %11 {offsets = [0, 54], sizes = [4, 128], strides = [1, 1]} : vector<4x256xf32> to vector<4x128xf32>
    %40 = vector.extract_strided_slice %11 {offsets = [0, 64], sizes = [4, 128], strides = [1, 1]} : vector<4x256xf32> to vector<4x128xf32>
    %41 = vector.extract_strided_slice %11 {offsets = [0, 65], sizes = [4, 128], strides = [1, 1]} : vector<4x256xf32> to vector<4x128xf32>
    %42 = vector.extract_strided_slice %11 {offsets = [0, 66], sizes = [4, 128], strides = [1, 1]} : vector<4x256xf32> to vector<4x128xf32>
    %43 = vector.extract_strided_slice %11 {offsets = [0, 67], sizes = [4, 128], strides = [1, 1]} : vector<4x256xf32> to vector<4x128xf32>
    %44 = vector.extract_strided_slice %11 {offsets = [0, 68], sizes = [4, 128], strides = [1, 1]} : vector<4x256xf32> to vector<4x128xf32>
    %45 = vector.extract_strided_slice %11 {offsets = [0, 69], sizes = [4, 128], strides = [1, 1]} : vector<4x256xf32> to vector<4x128xf32>
    %46 = vector.extract_strided_slice %11 {offsets = [0, 70], sizes = [4, 128], strides = [1, 1]} : vector<4x256xf32> to vector<4x128xf32>
    %47 = vector.extract_strided_slice %11 {offsets = [0, 80], sizes = [4, 128], strides = [1, 1]} : vector<4x256xf32> to vector<4x128xf32>
    %48 = vector.extract_strided_slice %11 {offsets = [0, 81], sizes = [4, 128], strides = [1, 1]} : vector<4x256xf32> to vector<4x128xf32>
    %49 = vector.extract_strided_slice %11 {offsets = [0, 82], sizes = [4, 128], strides = [1, 1]} : vector<4x256xf32> to vector<4x128xf32>
    %50 = vector.extract_strided_slice %11 {offsets = [0, 83], sizes = [4, 128], strides = [1, 1]} : vector<4x256xf32> to vector<4x128xf32>
    %51 = vector.extract_strided_slice %11 {offsets = [0, 84], sizes = [4, 128], strides = [1, 1]} : vector<4x256xf32> to vector<4x128xf32>
    %52 = vector.extract_strided_slice %11 {offsets = [0, 85], sizes = [4, 128], strides = [1, 1]} : vector<4x256xf32> to vector<4x128xf32>
    %53 = vector.extract_strided_slice %11 {offsets = [0, 86], sizes = [4, 128], strides = [1, 1]} : vector<4x256xf32> to vector<4x128xf32>
    %54 = vector.extract_strided_slice %11 {offsets = [0, 96], sizes = [4, 128], strides = [1, 1]} : vector<4x256xf32> to vector<4x128xf32>
    %55 = vector.extract_strided_slice %11 {offsets = [0, 97], sizes = [4, 128], strides = [1, 1]} : vector<4x256xf32> to vector<4x128xf32>
    %56 = vector.extract_strided_slice %11 {offsets = [0, 98], sizes = [4, 128], strides = [1, 1]} : vector<4x256xf32> to vector<4x128xf32>
    %57 = vector.extract_strided_slice %11 {offsets = [0, 99], sizes = [4, 128], strides = [1, 1]} : vector<4x256xf32> to vector<4x128xf32>
    %58 = vector.extract_strided_slice %11 {offsets = [0, 100], sizes = [4, 128], strides = [1, 1]} : vector<4x256xf32> to vector<4x128xf32>
    %59 = vector.extract_strided_slice %11 {offsets = [0, 101], sizes = [4, 128], strides = [1, 1]} : vector<4x256xf32> to vector<4x128xf32>
    %60 = vector.extract_strided_slice %11 {offsets = [0, 102], sizes = [4, 128], strides = [1, 1]} : vector<4x256xf32> to vector<4x128xf32>
    %61 = tpu.concatenate %12, %13, %14, %15, %16, %17, %18, %19, %20, %21, %22, %23, %24, %25, %26, %27 in 0 : vector<4x128xf32>, vector<4x128xf32>, vector<4x128xf32>, vector<4x128xf32>, vector<4x128xf32>, vector<4x128xf32>, vector<4x128xf32>, vector<4x128xf32>, vector<4x128xf32>, vector<4x128xf32>, vector<4x128xf32>, vector<4x128xf32>, vector<4x128xf32>, vector<4x128xf32>, vector<4x128xf32>, vector<4x128xf32> -> vector<64x128xf32>
    %62 = tpu.concatenate %28, %29, %30, %31, %32, %33, %34, %35, %36, %37, %38, %39, %40, %41, %42, %43 in 0 : vector<4x128xf32>, vector<4x128xf32>, vector<4x128xf32>, vector<4x128xf32>, vector<4x128xf32>, vector<4x128xf32>, vector<4x128xf32>, vector<4x128xf32>, vector<4x128xf32>, vector<4x128xf32>, vector<4x128xf32>, vector<4x128xf32>, vector<4x128xf32>, vector<4x128xf32>, vector<4x128xf32>, vector<4x128xf32> -> vector<64x128xf32>
    %63 = tpu.concatenate %44, %45, %46, %47, %48, %49, %50, %51, %52, %53, %54, %55, %56, %57, %58, %59 in 0 : vector<4x128xf32>, vector<4x128xf32>, vector<4x128xf32>, vector<4x128xf32>, vector<4x128xf32>, vector<4x128xf32>, vector<4x128xf32>, vector<4x128xf32>, vector<4x128xf32>, vector<4x128xf32>, vector<4x128xf32>, vector<4x128xf32>, vector<4x128xf32>, vector<4x128xf32>, vector<4x128xf32>, vector<4x128xf32> -> vector<64x128xf32>
    %64 = tpu.concatenate %61, %62, %63, %60 in 0 : vector<64x128xf32>, vector<64x128xf32>, vector<64x128xf32>, vector<4x128xf32> -> vector<196x128xf32>
    %c0_4 = arith.constant 0 : index
    %c0_5 = arith.constant 0 : index
    %65 = vector.load %arg5[%c0_4, %c0_5] : memref<8x196xf32, #tpu.memory_space<vmem>>, vector<8x196xf32>
    %cst_6 = arith.constant dense<0.000000e+00> : vector<8x128xf32>
    %66 = tpu.matmul %65, %64, %cst_6 {dimension_numbers = #tpu.dot_dimension_numbers<[1], [0], [0], [1], [0, 0, 1, 1], [], []>} : vector<8x196xf32>, vector<196x128xf32>, vector<8x128xf32> -> vector<8x128xf32>
    %c0_7 = arith.constant 0 : index
    %c0_8 = arith.constant 0 : index
    %67 = vector.load %arg6[%c0_7, %c0_8] : memref<8x1xf32, #tpu.memory_space<vmem>>, vector<8x1xf32>
    %68 = vector.broadcast %67 : vector<8x1xf32> to vector<8x128xf32>
    %69 = arith.addf %66, %68 : vector<8x128xf32>
    %cst_9 = arith.constant 0.000000e+00 : f32
    %70 = vector.broadcast %cst_9 : f32 to vector<8x128xf32>
    %71 = arith.cmpf oge, %69, %70 : vector<8x128xf32>
    %cst_10 = arith.constant 0.00999999977 : f32
    %72 = vector.broadcast %cst_10 : f32 to vector<8x128xf32>
    %73 = arith.mulf %72, %69 : vector<8x128xf32>
    %74 = arith.select %71, %69, %73 : vector<8x128xi1>, vector<8x128xf32>
    %c0_11 = arith.constant 0 : index
    %c0_12 = arith.constant 0 : index
    %75 = vector.load %arg3[%c0_11, %c0_12] : memref<1x128xf32, #tpu.memory_space<vmem>>, vector<1x128xf32>
    %76 = vector.broadcast %75 : vector<1x128xf32> to vector<8x128xf32>
    %77 = arith.mulf %74, %76 : vector<8x128xf32>
    %cst_13 = arith.constant 0.000000e+00 : f32
    %78 = vector.broadcast %cst_13 : f32 to vector<8x51xf32>
    %cst_14 = arith.constant 0.000000e+00 : f32
    %79 = vector.broadcast %cst_14 : f32 to vector<8x77xf32>
    %80 = tpu.concatenate %78, %77, %79 in 1 : vector<8x51xf32>, vector<8x128xf32>, vector<8x77xf32> -> vector<8x256xf32>
    %81 = vector.extract_strided_slice %80 {offsets = [0, 0], sizes = [8, 128], strides = [1, 1]} : vector<8x256xf32> to vector<8x128xf32>
    %82 = vector.extract_strided_slice %80 {offsets = [0, 1], sizes = [8, 128], strides = [1, 1]} : vector<8x256xf32> to vector<8x128xf32>
    %83 = vector.extract_strided_slice %80 {offsets = [0, 2], sizes = [8, 128], strides = [1, 1]} : vector<8x256xf32> to vector<8x128xf32>
    %84 = vector.extract_strided_slice %80 {offsets = [0, 3], sizes = [8, 128], strides = [1, 1]} : vector<8x256xf32> to vector<8x128xf32>
    %85 = vector.extract_strided_slice %80 {offsets = [0, 4], sizes = [8, 128], strides = [1, 1]} : vector<8x256xf32> to vector<8x128xf32>
    %86 = vector.extract_strided_slice %80 {offsets = [0, 5], sizes = [8, 128], strides = [1, 1]} : vector<8x256xf32> to vector<8x128xf32>
    %87 = vector.extract_strided_slice %80 {offsets = [0, 6], sizes = [8, 128], strides = [1, 1]} : vector<8x256xf32> to vector<8x128xf32>
    %88 = vector.extract_strided_slice %80 {offsets = [0, 16], sizes = [8, 128], strides = [1, 1]} : vector<8x256xf32> to vector<8x128xf32>
    %89 = vector.extract_strided_slice %80 {offsets = [0, 17], sizes = [8, 128], strides = [1, 1]} : vector<8x256xf32> to vector<8x128xf32>
    %90 = vector.extract_strided_slice %80 {offsets = [0, 18], sizes = [8, 128], strides = [1, 1]} : vector<8x256xf32> to vector<8x128xf32>
    %91 = vector.extract_strided_slice %80 {offsets = [0, 19], sizes = [8, 128], strides = [1, 1]} : vector<8x256xf32> to vector<8x128xf32>
    %92 = vector.extract_strided_slice %80 {offsets = [0, 20], sizes = [8, 128], strides = [1, 1]} : vector<8x256xf32> to vector<8x128xf32>
    %93 = vector.extract_strided_slice %80 {offsets = [0, 21], sizes = [8, 128], strides = [1, 1]} : vector<8x256xf32> to vector<8x128xf32>
    %94 = vector.extract_strided_slice %80 {offsets = [0, 22], sizes = [8, 128], strides = [1, 1]} : vector<8x256xf32> to vector<8x128xf32>
    %95 = vector.extract_strided_slice %80 {offsets = [0, 32], sizes = [8, 128], strides = [1, 1]} : vector<8x256xf32> to vector<8x128xf32>
    %96 = vector.extract_strided_slice %80 {offsets = [0, 33], sizes = [8, 128], strides = [1, 1]} : vector<8x256xf32> to vector<8x128xf32>
    %97 = vector.extract_strided_slice %80 {offsets = [0, 34], sizes = [8, 128], strides = [1, 1]} : vector<8x256xf32> to vector<8x128xf32>
    %98 = vector.extract_strided_slice %80 {offsets = [0, 35], sizes = [8, 128], strides = [1, 1]} : vector<8x256xf32> to vector<8x128xf32>
    %99 = vector.extract_strided_slice %80 {offsets = [0, 36], sizes = [8, 128], strides = [1, 1]} : vector<8x256xf32> to vector<8x128xf32>
    %100 = vector.extract_strided_slice %80 {offsets = [0, 37], sizes = [8, 128], strides = [1, 1]} : vector<8x256xf32> to vector<8x128xf32>
    %101 = vector.extract_strided_slice %80 {offsets = [0, 38], sizes = [8, 128], strides = [1, 1]} : vector<8x256xf32> to vector<8x128xf32>
    %102 = vector.extract_strided_slice %80 {offsets = [0, 48], sizes = [8, 128], strides = [1, 1]} : vector<8x256xf32> to vector<8x128xf32>
    %103 = vector.extract_strided_slice %80 {offsets = [0, 49], sizes = [8, 128], strides = [1, 1]} : vector<8x256xf32> to vector<8x128xf32>
    %104 = vector.extract_strided_slice %80 {offsets = [0, 50], sizes = [8, 128], strides = [1, 1]} : vector<8x256xf32> to vector<8x128xf32>
    %105 = vector.extract_strided_slice %80 {offsets = [0, 51], sizes = [8, 128], strides = [1, 1]} : vector<8x256xf32> to vector<8x128xf32>
    %106 = vector.extract_strided_slice %80 {offsets = [0, 52], sizes = [8, 128], strides = [1, 1]} : vector<8x256xf32> to vector<8x128xf32>
    %107 = vector.extract_strided_slice %80 {offsets = [0, 53], sizes = [8, 128], strides = [1, 1]} : vector<8x256xf32> to vector<8x128xf32>
    %108 = vector.extract_strided_slice %80 {offsets = [0, 54], sizes = [8, 128], strides = [1, 1]} : vector<8x256xf32> to vector<8x128xf32>
    %109 = vector.extract_strided_slice %80 {offsets = [0, 64], sizes = [8, 128], strides = [1, 1]} : vector<8x256xf32> to vector<8x128xf32>
    %110 = vector.extract_strided_slice %80 {offsets = [0, 65], sizes = [8, 128], strides = [1, 1]} : vector<8x256xf32> to vector<8x128xf32>
    %111 = vector.extract_strided_slice %80 {offsets = [0, 66], sizes = [8, 128], strides = [1, 1]} : vector<8x256xf32> to vector<8x128xf32>
    %112 = vector.extract_strided_slice %80 {offsets = [0, 67], sizes = [8, 128], strides = [1, 1]} : vector<8x256xf32> to vector<8x128xf32>
    %113 = vector.extract_strided_slice %80 {offsets = [0, 68], sizes = [8, 128], strides = [1, 1]} : vector<8x256xf32> to vector<8x128xf32>
    %114 = vector.extract_strided_slice %80 {offsets = [0, 69], sizes = [8, 128], strides = [1, 1]} : vector<8x256xf32> to vector<8x128xf32>
    %115 = vector.extract_strided_slice %80 {offsets = [0, 70], sizes = [8, 128], strides = [1, 1]} : vector<8x256xf32> to vector<8x128xf32>
    %116 = vector.extract_strided_slice %80 {offsets = [0, 80], sizes = [8, 128], strides = [1, 1]} : vector<8x256xf32> to vector<8x128xf32>
    %117 = vector.extract_strided_slice %80 {offsets = [0, 81], sizes = [8, 128], strides = [1, 1]} : vector<8x256xf32> to vector<8x128xf32>
    %118 = vector.extract_strided_slice %80 {offsets = [0, 82], sizes = [8, 128], strides = [1, 1]} : vector<8x256xf32> to vector<8x128xf32>
    %119 = vector.extract_strided_slice %80 {offsets = [0, 83], sizes = [8, 128], strides = [1, 1]} : vector<8x256xf32> to vector<8x128xf32>
    %120 = vector.extract_strided_slice %80 {offsets = [0, 84], sizes = [8, 128], strides = [1, 1]} : vector<8x256xf32> to vector<8x128xf32>
    %121 = vector.extract_strided_slice %80 {offsets = [0, 85], sizes = [8, 128], strides = [1, 1]} : vector<8x256xf32> to vector<8x128xf32>
    %122 = vector.extract_strided_slice %80 {offsets = [0, 86], sizes = [8, 128], strides = [1, 1]} : vector<8x256xf32> to vector<8x128xf32>
    %123 = vector.extract_strided_slice %80 {offsets = [0, 96], sizes = [8, 128], strides = [1, 1]} : vector<8x256xf32> to vector<8x128xf32>
    %124 = vector.extract_strided_slice %80 {offsets = [0, 97], sizes = [8, 128], strides = [1, 1]} : vector<8x256xf32> to vector<8x128xf32>
    %125 = vector.extract_strided_slice %80 {offsets = [0, 98], sizes = [8, 128], strides = [1, 1]} : vector<8x256xf32> to vector<8x128xf32>
    %126 = vector.extract_strided_slice %80 {offsets = [0, 99], sizes = [8, 128], strides = [1, 1]} : vector<8x256xf32> to vector<8x128xf32>
    %127 = vector.extract_strided_slice %80 {offsets = [0, 100], sizes = [8, 128], strides = [1, 1]} : vector<8x256xf32> to vector<8x128xf32>
    %128 = vector.extract_strided_slice %80 {offsets = [0, 101], sizes = [8, 128], strides = [1, 1]} : vector<8x256xf32> to vector<8x128xf32>
    %129 = vector.extract_strided_slice %80 {offsets = [0, 102], sizes = [8, 128], strides = [1, 1]} : vector<8x256xf32> to vector<8x128xf32>
    %130 = tpu.concatenate %81, %82, %83, %84, %85, %86, %87, %88, %89, %90, %91, %92, %93, %94, %95, %96 in 0 : vector<8x128xf32>, vector<8x128xf32>, vector<8x128xf32>, vector<8x128xf32>, vector<8x128xf32>, vector<8x128xf32>, vector<8x128xf32>, vector<8x128xf32>, vector<8x128xf32>, vector<8x128xf32>, vector<8x128xf32>, vector<8x128xf32>, vector<8x128xf32>, vector<8x128xf32>, vector<8x128xf32>, vector<8x128xf32> -> vector<128x128xf32>
    %131 = tpu.concatenate %97, %98, %99, %100, %101, %102, %103, %104, %105, %106, %107, %108, %109, %110, %111, %112 in 0 : vector<8x128xf32>, vector<8x128xf32>, vector<8x128xf32>, vector<8x128xf32>, vector<8x128xf32>, vector<8x128xf32>, vector<8x128xf32>, vector<8x128xf32>, vector<8x128xf32>, vector<8x128xf32>, vector<8x128xf32>, vector<8x128xf32>, vector<8x128xf32>, vector<8x128xf32>, vector<8x128xf32>, vector<8x128xf32> -> vector<128x128xf32>
    %132 = tpu.concatenate %113, %114, %115, %116, %117, %118, %119, %120, %121, %122, %123, %124, %125, %126, %127, %128 in 0 : vector<8x128xf32>, vector<8x128xf32>, vector<8x128xf32>, vector<8x128xf32>, vector<8x128xf32>, vector<8x128xf32>, vector<8x128xf32>, vector<8x128xf32>, vector<8x128xf32>, vector<8x128xf32>, vector<8x128xf32>, vector<8x128xf32>, vector<8x128xf32>, vector<8x128xf32>, vector<8x128xf32>, vector<8x128xf32> -> vector<128x128xf32>
    %133 = tpu.concatenate %130, %131, %132, %129 in 0 : vector<128x128xf32>, vector<128x128xf32>, vector<128x128xf32>, vector<8x128xf32> -> vector<392x128xf32>
    %c0_15 = arith.constant 0 : index
    %c0_16 = arith.constant 0 : index
    %134 = vector.load %arg7[%c0_15, %c0_16] : memref<8x392xf32, #tpu.memory_space<vmem>>, vector<8x392xf32>
    %cst_17 = arith.constant dense<0.000000e+00> : vector<8x128xf32>
    %135 = tpu.matmul %134, %133, %cst_17 {dimension_numbers = #tpu.dot_dimension_numbers<[1], [0], [0], [1], [0, 0, 1, 1], [], []>} : vector<8x392xf32>, vector<392x128xf32>, vector<8x128xf32> -> vector<8x128xf32>
    %c0_18 = arith.constant 0 : index
    %c0_19 = arith.constant 0 : index
    %136 = vector.load %arg8[%c0_18, %c0_19] : memref<8x1xf32, #tpu.memory_space<vmem>>, vector<8x1xf32>
    %137 = vector.broadcast %136 : vector<8x1xf32> to vector<8x128xf32>
    %138 = arith.addf %135, %137 : vector<8x128xf32>
    %cst_20 = arith.constant 0.000000e+00 : f32
    %139 = vector.broadcast %cst_20 : f32 to vector<8x128xf32>
    %140 = arith.cmpf oge, %138, %139 : vector<8x128xf32>
    %cst_21 = arith.constant 0.00999999977 : f32
    %141 = vector.broadcast %cst_21 : f32 to vector<8x128xf32>
    %142 = arith.mulf %141, %138 : vector<8x128xf32>
    %143 = arith.select %140, %138, %142 : vector<8x128xi1>, vector<8x128xf32>
    %c0_22 = arith.constant 0 : index
    %c0_23 = arith.constant 0 : index
    %c0_24 = arith.constant 0 : index
    %144 = vector.load %arg9[%c0_22, %c0_23, %c0_24] : memref<4x4x8xf32, #tpu.memory_space<vmem>>, vector<1x4x8xf32>
    %145 = vector.shape_cast %144 : vector<1x4x8xf32> to vector<4x8xf32>
    %cst_25 = arith.constant dense<0.000000e+00> : vector<4x128xf32>
    %146 = tpu.matmul %145, %143, %cst_25 {dimension_numbers = #tpu.dot_dimension_numbers<[1], [0], [0], [1], [0, 0, 1, 1], [], []>} : vector<4x8xf32>, vector<8x128xf32>, vector<4x128xf32> -> vector<4x128xf32>
    %c1 = arith.constant 1 : index
    %c0_26 = arith.constant 0 : index
    %c0_27 = arith.constant 0 : index
    %147 = vector.load %arg9[%c1, %c0_26, %c0_27] : memref<4x4x8xf32, #tpu.memory_space<vmem>>, vector<1x4x8xf32>
    %148 = vector.shape_cast %147 : vector<1x4x8xf32> to vector<4x8xf32>
    %cst_28 = arith.constant dense<0.000000e+00> : vector<4x128xf32>
    %149 = tpu.matmul %148, %143, %cst_28 {dimension_numbers = #tpu.dot_dimension_numbers<[1], [0], [0], [1], [0, 0, 1, 1], [], []>} : vector<4x8xf32>, vector<8x128xf32>, vector<4x128xf32> -> vector<4x128xf32>
    %c2 = arith.constant 2 : index
    %c0_29 = arith.constant 0 : index
    %c0_30 = arith.constant 0 : index
    %150 = vector.load %arg9[%c2, %c0_29, %c0_30] : memref<4x4x8xf32, #tpu.memory_space<vmem>>, vector<1x4x8xf32>
    %151 = vector.shape_cast %150 : vector<1x4x8xf32> to vector<4x8xf32>
    %cst_31 = arith.constant dense<0.000000e+00> : vector<4x128xf32>
    %152 = tpu.matmul %151, %143, %cst_31 {dimension_numbers = #tpu.dot_dimension_numbers<[1], [0], [0], [1], [0, 0, 1, 1], [], []>} : vector<4x8xf32>, vector<8x128xf32>, vector<4x128xf32> -> vector<4x128xf32>
    %c3 = arith.constant 3 : index
    %c0_32 = arith.constant 0 : index
    %c0_33 = arith.constant 0 : index
    %153 = vector.load %arg9[%c3, %c0_32, %c0_33] : memref<4x4x8xf32, #tpu.memory_space<vmem>>, vector<1x4x8xf32>
    %154 = vector.shape_cast %153 : vector<1x4x8xf32> to vector<4x8xf32>
    %cst_34 = arith.constant dense<0.000000e+00> : vector<4x128xf32>
    %155 = tpu.matmul %154, %143, %cst_34 {dimension_numbers = #tpu.dot_dimension_numbers<[1], [0], [0], [1], [0, 0, 1, 1], [], []>} : vector<4x8xf32>, vector<8x128xf32>, vector<4x128xf32> -> vector<4x128xf32>
    %156 = tpu.concatenate %146, %149, %152, %155 in 1 : vector<4x128xf32>, vector<4x128xf32>, vector<4x128xf32>, vector<4x128xf32> -> vector<4x512xf32>
    %c0_35 = arith.constant 0 : index
    %c0_36 = arith.constant 0 : index
    %157 = vector.load %arg4[%c0_35, %c0_36] : memref<512x256xf32, #tpu.memory_space<vmem>>, vector<512x256xf32>
    %cst_37 = arith.constant dense<0.000000e+00> : vector<4x256xf32>
    %158 = tpu.matmul %156, %157, %cst_37 {dimension_numbers = #tpu.dot_dimension_numbers<[1], [0], [0], [1], [0, 0, 1, 1], [], []>} : vector<4x512xf32>, vector<512x256xf32>, vector<4x256xf32> -> vector<4x256xf32>
    %c0_38 = arith.constant 0 : index
    %c0_39 = arith.constant 0 : index
    %159 = vector.load %arg10[%c0_38, %c0_39] : memref<4x1xf32, #tpu.memory_space<vmem>>, vector<4x1xf32>
    %160 = vector.broadcast %159 : vector<4x1xf32> to vector<4x256xf32>
    %161 = arith.addf %158, %160 : vector<4x256xf32>
    %c0_40 = arith.constant 0 : index
    %c0_41 = arith.constant 0 : index
    %c0_42 = arith.constant 0 : index
    %162 = vector.load %arg11[%c0_40, %c0_41, %c0_42] : memref<1x4x256xf32, #tpu.memory_space<vmem>>, vector<1x4x256xf32>
    %163 = vector.shape_cast %162 : vector<1x4x256xf32> to vector<4x256xf32>
    %164 = vector.shape_cast %161 : vector<4x256xf32> to vector<1x4x256xf32>
    tpu.vector_store %arg11[%c0_40, %c0_41, %c0_42], %164 {strides = array<i32>} : memref<1x4x256xf32, #tpu.memory_space<vmem>>, vector<1x4x256xf32>,
    return
  }
  func.func @transform_0(%arg0: i32) -> (i32, i32, i32) {
    %c0_i32 = arith.constant 0 : i32
    %c0_i32_0 = arith.constant 0 : i32
    %c0_i32_1 = arith.constant 0 : i32
    return %arg0, %c0_i32, %c0_i32_0 : i32, i32, i32
  }
  func.func @transform_1(%arg0: i32) -> (i32, i32) {
    %c0_i32 = arith.constant 0 : i32
    %c0_i32_0 = arith.constant 0 : i32
    %c0_i32_1 = arith.constant 0 : i32
    return %c0_i32, %c0_i32_0 : i32, i32
  }
  func.func @transform_2(%arg0: i32) -> (i32, i32) {
    %c0_i32 = arith.constant 0 : i32
    %c0_i32_0 = arith.constant 0 : i32
    %c0_i32_1 = arith.constant 0 : i32
    return %c0_i32, %c0_i32_0 : i32, i32
  }
  func.func @transform_3(%arg0: i32) -> (i32, i32) {
    %c0_i32 = arith.constant 0 : i32
    %c0_i32_0 = arith.constant 0 : i32
    %c0_i32_1 = arith.constant 0 : i32
    return %c0_i32, %c0_i32_0 : i32, i32
  }
  func.func @transform_4(%arg0: i32) -> (i32, i32) {
    %c0_i32 = arith.constant 0 : i32
    %c0_i32_0 = arith.constant 0 : i32
    %c0_i32_1 = arith.constant 0 : i32
    return %c0_i32, %c0_i32_0 : i32, i32
  }
  func.func @transform_5(%arg0: i32) -> (i32, i32) {
    %c0_i32 = arith.constant 0 : i32
    %c0_i32_0 = arith.constant 0 : i32
    %c0_i32_1 = arith.constant 0 : i32
    return %c0_i32, %c0_i32_0 : i32, i32
  }
  func.func @transform_6(%arg0: i32) -> (i32, i32) {
    %c0_i32 = arith.constant 0 : i32
    %c0_i32_0 = arith.constant 0 : i32
    %c0_i32_1 = arith.constant 0 : i32
    return %c0_i32, %c0_i32_0 : i32, i32
  }
  func.func @transform_7(%arg0: i32) -> (i32, i32) {
    %c0_i32 = arith.constant 0 : i32
    %c0_i32_0 = arith.constant 0 : i32
    %c0_i32_1 = arith.constant 0 : i32
    return %c0_i32, %c0_i32_0 : i32, i32
  }
  func.func @transform_8(%arg0: i32) -> (i32, i32, i32) {
    %c0_i32 = arith.constant 0 : i32
    %c0_i32_0 = arith.constant 0 : i32
    %c0_i32_1 = arith.constant 0 : i32
    %c0_i32_2 = arith.constant 0 : i32
    return %c0_i32, %c0_i32_0, %c0_i32_1 : i32, i32, i32
  }
  func.func @transform_9(%arg0: i32) -> (i32, i32) {
    %c0_i32 = arith.constant 0 : i32
    %c0_i32_0 = arith.constant 0 : i32
    %c0_i32_1 = arith.constant 0 : i32
    return %c0_i32, %c0_i32_0 : i32, i32
  }
  func.func @transform_10(%arg0: i32) -> (i32, i32, i32) {
    %c0_i32 = arith.constant 0 : i32
    %c0_i32_0 = arith.constant 0 : i32
    %c0_i32_1 = arith.constant 0 : i32
    return %arg0, %c0_i32, %c0_i32_0 : i32, i32, i32
  }
}

</mosaic_0001>

<bundles_post_ra>
// kernel: ublock_mid_forward.1
= control target key start
LH: loop header
LB: loop body
LE: loop exit
PB: predicated region body
PF: predicated region fallthrough
CT: control target
= control target key end

     0   :  { %15 = vsyncpa [#allocation3], 0  ;;  %s3788_s0 = inlined_call_operand.vmem [shape: f32[2,4,256], index: 0, kind: input, shape index: {}]   ;;  %s3789_s1 = inlined_call_operand.hbm [shape: f32[256,256], index: 1, kind: input, shape index: {}]   ;;  %s3790_s2 = inlined_call_operand.vmem [shape: f32[1,128], index: 2, kind: input, shape index: {}]   ;;  %s3791_s3 = inlined_call_operand.hbm [shape: f32[512,256], index: 3, kind: input, shape index: {}]   ;;  %s3792_s4 = inlined_call_operand.vmem [shape: f32[8,196], index: 4, kind: input, shape index: {}]   ;;  %s3793_s5 = inlined_call_operand.vmem [shape: f32[8,1], index: 5, kind: input, shape index: {}]   ;;  %s3794_s6 = inlined_call_operand.vmem [shape: f32[8,392], index: 6, kind: input, shape index: {}]   ;;  %s3795_s7 = inlined_call_operand.vmem [shape: f32[8,1], index: 7, kind: input, shape index: {}]   ;;  %s3796_s8 = inlined_call_operand.vmem [shape: f32[4,4,8], index: 8, kind: input, shape index: {}]   ;;  %s3797_s9 = inlined_call_operand.vmem [shape: f32[4,1], index: 9, kind: input, shape index: {}]   ;;  %s3798_s10 = inlined_call_operand.vmem [shape: f32[2,4,256], index: 10, kind: output, shape index: {}]  }
   0x1   :  { %16 = vsyncpa [#allocation5], 0  ;;  %s3220_s13 = smov 0  }
   0x2 LB: > { %s3226_s14 = sadd.s32 4294967295, %s3127_s13   ;;  %p2141_p0 = scmp.ge.s32.totalorder %s3127_s13, 1  ;;  %s3127_s13 = sphi %s3220_s13, %s22_s13  }
   0x3   : > { %p268_p1 = scmp.lt.s32.totalorder %s3127_s13, 3  ;;  %s3129_s15 = smov [#allocation2]  }
   0x4   : > { %s280_s16 = sshll.u32 %s3129_s15, 4  ;;  %p3799_p3 = scmp.eq.s32.totalorder %s3226_s14, 0  ;;  %s281_s16 = int_to_ptr.vmem [resolvable:$true] %s280_s16 }
   0x5   : > { %p3230_p2 = pnand %p2141_p0, %p268_p1  ;;  %s3130_s18 = smov [#allocation4]  }
   0x6   : > { %s296_s19 = sshll.u32 %s3130_s18, 4  ;;  %s3057_s23 = scalar_lea.hbm %s3789_s1, 8192  ;;  %s3243_s19 = int_to_ptr.vmem [resolvable:$true] %s296_s19 }
   0x7   : > { %s3831_s17 = scalar_select %p3230_p2, 1, 0 }
   0x8   : > { %p2529_p4 = pneg %p3230_p2  ;;  %p3058_p6 = scmp.ne.s32.totalorder %s3789_s1, %s3057_s23 }
   0x9   : > { %p3064_p10 = scmp.lt.u32.totalorder %s3057_s23, %s3789_s1 }
   0xa   : > { %p3239_p5 = pnand %p3799_p3, %p2529_p4 }
   0xc   : > { %p3059_p7 = pneg %p3239_p5 }
   0xe   : > { %p3060_p8 = pnand %p3059_p7, %p3058_p6 }
  0x10   : > { %p3061_p9 = pneg %p3060_p8 }
  0x12   : > { %p3066_p11 = pnand %p3064_p10, %p3061_p9 }
  0x14   : > { %3069 = shalt.err (!%p3066_p11)
}
  0x15   : > { %s3070_s28 = scalar_lea.vmem %s281_s16, 8192  ;;  %p3078_p1 = scmp.lt.s32.totalorder %s281_s16, %s281_s16 }
  0x16   : > { %p3071_p12 = scmp.ne.s32.totalorder %s281_s16, %s3070_s28  ;;  %p3079_p4 = scmp.lt.s32.totalorder %s3070_s28, %s3070_s28 }
  0x18   : > { %p3073_p13 = pnand %p3071_p12, %p3059_p7  ;;  %p3080_p3 = por %p3079_p4, %p3078_p1 }
  0x1a   : > { %p3074_p0 = pneg %p3073_p13 }
  0x1c   : > { %p3081_p2 = pnand %p3080_p3, %p3074_p0 }
  0x1e   : > { %3084 = shalt.err (!%p3081_p2)
}
  0x1f   : > { %s3131_s29 = smov 256   ;;  %s3132_s30 = smov 16  }
  0x20   : > { %2532 = dma.hbm_to_vmem [thread:$0]  (!%p3239_p5), %s3789_s1, 8192, %s281_s16, [#allocation3], %s3131_s29, %s3131_s29, %s3132_s30  }
  0x21   : > { %s3085_s21 = scalar_lea.hbm %s3791_s3, 16384 }
  0x22   : > { %p3086_p6 = scmp.ne.s32.totalorder %s3791_s3, %s3085_s21  ;;  %p3092_p8 = scmp.lt.u32.totalorder %s3085_s21, %s3791_s3 }
  0x24   : > { %p3088_p2 = pnand %p3086_p6, %p3059_p7 }
  0x26   : > { %p3089_p3 = pneg %p3088_p2 }
  0x28   : > { %p3094_p9 = pnand %p3092_p8, %p3089_p3 }
  0x2a   : > { %3097 = shalt.err (!%p3094_p9)
}
  0x2b   : > { %s3098_s16 = scalar_lea.vmem %s3243_s19, 16384  ;;  %p3106_p13 = scmp.lt.s32.totalorder %s3243_s19, %s3243_s19 }
  0x2c   : > { %p3099_p10 = scmp.ne.s32.totalorder %s3243_s19, %s3098_s16  ;;  %p3107_p0 = scmp.lt.s32.totalorder %s3098_s16, %s3098_s16 }
  0x2e   : > { %p3101_p11 = pnand %p3099_p10, %p3059_p7  ;;  %p3108_p1 = por %p3107_p0, %p3106_p13 }
  0x30   : > { %p3102_p12 = pneg %p3101_p11 }
  0x32   : > { %p3109_p4 = pnand %p3108_p1, %p3102_p12 }
  0x34   : > { %3112 = shalt.err (!%p3109_p4)
}
  0x35   : > { %2535 = dma.hbm_to_vmem [thread:$0]  (!%p3239_p5), %s3791_s3, 16384, %s3243_s19, [#allocation5], %s3131_s29, %s3131_s29, %s3132_s30  }
  0x36   : > { %p3833_p6 = scmp.ne.s32.totalorder %s3831_s17, 0 }
  0x37   : > { %p3834_p2 = scmp.eq.s32.totalorder (!%p3833_p6), %s3226_s14, 0 }
  0x38   : > { %338 = sbr.rel (%p3833_p6) target bundleno = 2189 (0x88d), region = 60 }
  0x3f   : > { %3118 = dma.done.wait (%p3834_p2), [#allocation3], 8192   ;;  %p3835_p7 = pmov %p3834_p2 }
  0x40   : > { %p3836_p3 = pmov %p3834_p2 }
  0x41   : > { %3120 = vsyncadd (%p3835_p7), [#allocation3], 4294959104 }
  0x42   : > { %3122 = dma.done.wait (%p3836_p3), [#allocation5], 16384   ;;  %p3837_p8 = pmov %p3834_p2 }
  0x43   : > { %p380_p9 = scmp.lt.s32.totalorder %s3226_s14, 1  ;;  %s3133_s29 = smov 127   ;;  %v422_v2 = vld [vmem:[#allocation2 + $0x8] sm:$0xff]  ;;  %v424_v3 = vld [vmem:[#allocation2 + $0x18] sm:$0xff]  ;;  %v421_v4 = vld [vmem:[#allocation2] sm:$0xff]  ;;  %vm397_vm0 = vcmask 1039360  }
  0x44   : > { %3124 = vsyncadd (%p3837_p8), [#allocation5], 4294950912  ;;  %v2232_v5 = vpack.c.bf16 %v424_v3, %v422_v2  ;;  %v423_v6 = vld [vmem:[#allocation2 + $0x10] sm:$0xff]  ;;  %v426_v7 = vld [vmem:[#allocation2 + $0x28] sm:$0xff]  ;;  %s3134_s30 = smov 112   ;;  %vm412_vm1 = vcmask 916480  }
  0x45   : > { %s3894_s14 = smov (!%p380_p9, %s3226_s14), 1  ;;  %v428_v8 = vld [vmem:[#allocation2 + $0x38] sm:$0xff]  ;;  %v2234_v9 = vpack.c.bf16 %v423_v6, %v421_v4  ;;  %v425_v11 = vld [vmem:[#allocation2 + $0x20] sm:$0xff]  ;;  %v427_v12 = vld [vmem:[#allocation2 + $0x30] sm:$0xff]  ;;  %s3135_s11 = smov 113   ;;  %vm666_vm2 = vcmask 1043456  }
  0x46   : > { %s3801_s17 = sshll.u32 %s3894_s14, 3  ;;  %v2236_v10 = vpack.c.bf16 %v428_v8, %v426_v7  ;;  %v430_v13 = vld [vmem:[#allocation2 + $0x48] sm:$0xff]  ;;  %2233 = vmatprep.subr.bf16.mxu1 %v2232_v5  ;;  %v432_v14 = vld [vmem:[#allocation2 + $0x58] sm:$0xff]  ;;  %v2238_v15 = vpack.c.bf16 %v427_v12, %v425_v11  ;;  %v429_v17 = vld [vmem:[#allocation2 + $0x40] sm:$0xff]  ;;  %s3136_s12 = smov 126   ;;  %vm580_vm3 = vcmask 1022976  }
  0x47   : > { %s384_s28 = scalar_lea.vmem %s3788_s0, %s3801_s17  ;;  %2235 = vmatpush1.bf16.msra.mxu1 %v2234_v9  ;;  %v2240_v16 = vpack.c.bf16 %v432_v14, %v430_v13  ;;  %v431_v18 = vld [vmem:[#allocation2 + $0x50] sm:$0xff]  ;;  %v434_v19 = vld [vmem:[#allocation2 + $0x68] sm:$0xff]  ;;  %v436_v20 = vld [vmem:[#allocation2 + $0x78] sm:$0xff]  ;;  %s3137_s15 = smov 124   ;;  %vm573_vm4 = vcmask 1031168   ;;  %vm691_vm5 = vcmask 924672  }
  0x48   : > { %v3312_v0 = vld [vmem:[%s384_s28] sm:$0xff]  ;;  %2237 = vmatprep.subr.bf16.mxu1 %v2236_v10  ;;  %v2242_v21 = vpack.c.bf16 %v431_v18, %v429_v17  ;;  %v2244_v22 = vpack.c.bf16 %v436_v20, %v434_v19  ;;  %v435_v24 = vld [vmem:[#allocation2 + $0x70] sm:$0xff]  ;;  %v438_v25 = vld [vmem:[#allocation2 + $0x88] sm:$0xff]  ;;  %s3139_s18 = smov 111   ;;  %s3140_s21 = smov 125   ;;  %vm614_vm6 = vcmask 908288  }
  0x49   : > { %393 = vrot.lane.b32.xlu0 %v3312_v0, %s3133_s29  ;;  %v392_v1 = vcombine.high %v3312_v0, %v3312_v0  ;;  %v433_v23 = vld [vmem:[#allocation2 + $0x60] sm:$0xff]  ;;  %v440_v26 = vld [vmem:[#allocation2 + $0x98] sm:$0xff]  ;;  %v439_v30 = vld [vmem:[#allocation2 + $0x90] sm:$0xff]  ;;  %s3141_s22 = smov 109   ;;  %s3142_s23 = smov 114   ;;  %vm587_vm7 = vcmask 1014784  }
  0x4a   : > { %v2246_v27 = vpack.c.bf16 %v435_v24, %v433_v23  ;;  %v2248_v28 = vpack.c.bf16 %v440_v26, %v438_v25  ;;  %v437_v29 = vld [vmem:[#allocation2 + $0x80] sm:$0xff]  ;;  %v442_v31 = vld [vmem:[#allocation2 + $0xa8] sm:$0xff]  ;;  %v444_v32 = vld [vmem:[#allocation2 + $0xb8] sm:$0xff]  ;;  %s3806_s24 = smov 110   ;;  %s3802_s25 = smov 96   ;;  %vm683_vm8 = vcmask 932864  }
  0x4b   : > { %2239 = vmatpush1.bf16.msra.mxu1 %v2238_v15  ;;  %v2250_v33 = vpack.c.bf16 %v439_v30, %v437_v29  ;;  %v2252_v34 = vpack.c.bf16 %v444_v32, %v442_v31  ;;  %v441_v35 = vld [vmem:[#allocation2 + $0xa0] sm:$0xff]  ;;  %v443_v36 = vld [vmem:[#allocation2 + $0xb0] sm:$0xff]  ;;  %v446_v37 = vld [vmem:[#allocation2 + $0xc8] sm:$0xff]  ;;  %s3803_s16 = smov 108   ;;  %s3804_s26 = smov 98   ;;  %vm621_vm9 = vcmask 900096  }
  0x4c   : > { %2241 = vmatprep.subr.bf16.mxu1 %v2240_v16  ;;  %v448_v38 = vld [vmem:[#allocation2 + $0xd8] sm:$0xff]  ;;  %v2254_v39 = vpack.c.bf16 %v443_v36, %v441_v35  ;;  %v445_v41 = vld [vmem:[#allocation2 + $0xc0] sm:$0xff]  ;;  %v447_v42 = vld [vmem:[#allocation2 + $0xd0] sm:$0xff]  ;;  %s3805_s27 = smov 95   ;;  %s3148_s19 = smov 116   ;;  %vm3814_vm10 = vcmask 891904  }
  0x4d   : > { %395 = vrot.lane.b32.xlu0 %v392_v1, %s3133_s29  ;;  %v2256_v40 = vpack.c.bf16 %v448_v38, %v446_v37  ;;  %v450_v43 = vld [vmem:[#allocation2 + $0xe8] sm:$0xff]  ;;  %v452_v44 = vld [vmem:[#allocation2 + $0xf8] sm:$0xff]  ;;  %v2258_v45 = vpack.c.bf16 %v447_v42, %v445_v41  ;;  %v449_v47 = vld [vmem:[#allocation2 + $0xe0] sm:$0xff]  ;;  %s3149_s20 = smov 97   ;;  %s3150_s28 = smov 100   ;;  %vm3808_vm11 = vcmask 883712  }
  0x4e   : > { %v2260_v46 = vpack.c.bf16 %v452_v44, %v450_v43  ;;  %v451_v48 = vld [vmem:[#allocation2 + $0xf0] sm:$0xff]  ;;  %v454_v49 = vld [vmem:[#allocation2 + $0x108] sm:$0xff]  ;;  %v456_v50 = vld [vmem:[#allocation2 + $0x118] sm:$0xff]  ;;  %s3151_s17 = smov 115   ;;  %vm3812_vm12 = vcmask 785408   ;;  %vm3809_vm13 = vcmask 777216  }
  0x4f   : > { %2243 = vmatpush1.bf16.msra.mxu1 %v2242_v21  ;;  %v2262_v51 = vpack.c.bf16 %v451_v48, %v449_v47  ;;  %v2264_v52 = vpack.c.bf16 %v456_v50, %v454_v49  ;;  %v453_v53 = vld [vmem:[#allocation2 + $0x100] sm:$0xff]  ;;  %v455_v54 = vld [vmem:[#allocation2 + $0x110] sm:$0xff]  ;;  %v458_v55 = vld [vmem:[#allocation2 + $0x128] sm:$0xff]  ;;  %vm3813_vm14 = vcmask 801792   ;;  %vm733_vm15 = vcmask 949248  }
  0x50   : > { %2245 = vmatprep.subr.bf16.mxu1 %v2244_v22  ;;  %v460_v56 = vld [vmem:[#allocation2 + $0x138] sm:$0xff]  ;;  %v2266_v57 = vpack.c.bf16 %v455_v54, %v453_v53  ;;  %v457_v59 = vld [vmem:[#allocation2 + $0x120] sm:$0xff]  ;;  %v459_v60 = vld [vmem:[#allocation2 + $0x130] sm:$0xff]  ;;  %v3138_v54 = vmov 0.0|0.0  }
  0x51   : > { %v2268_v58 = vpack.c.bf16 %v460_v56, %v458_v55  ;;  %v462_v61 = vld [vmem:[#allocation2 + $0x148] sm:$0xff]  ;;  %v464_v62 = vld [vmem:[#allocation2 + $0x158] sm:$0xff]  ;;  %v2270_v63 = vpack.c.bf16 %v459_v60, %v457_v59  ;;  %v461_v2 = vld [vmem:[#allocation2 + $0x140] sm:$0xff]  ;;  %2365 = vmatprep.subr.bf16.mxu0 %v3138_v54 }
  0x52   : > { %v2272_v1 = vpack.c.bf16 %v464_v62, %v462_v61  ;;  %v463_v3 = vld [vmem:[#allocation2 + $0x150] sm:$0xff]  ;;  %v466_v4 = vld [vmem:[#allocation2 + $0x168] sm:$0xff]  ;;  %v468_v5 = vld [vmem:[#allocation2 + $0x178] sm:$0xff] }
  0x53   : > { %2247 = vmatpush1.bf16.msra.mxu1 %v2246_v27  ;;  %v2274_v6 = vpack.c.bf16 %v463_v3, %v461_v2  ;;  %v2276_v7 = vpack.c.bf16 %v468_v5, %v466_v4  ;;  %v465_v8 = vld [vmem:[#allocation2 + $0x160] sm:$0xff]  ;;  %v467_v9 = vld [vmem:[#allocation2 + $0x170] sm:$0xff]  ;;  %v470_v10 = vld [vmem:[#allocation2 + $0x188] sm:$0xff] }
  0x54   : > { %2249 = vmatprep.subr.bf16.mxu1 %v2248_v28  ;;  %v472_v11 = vld [vmem:[#allocation2 + $0x198] sm:$0xff]  ;;  %v2278_v12 = vpack.c.bf16 %v467_v9, %v465_v8  ;;  %v469_v14 = vld [vmem:[#allocation2 + $0x180] sm:$0xff]  ;;  %v471_v15 = vld [vmem:[#allocation2 + $0x190] sm:$0xff] }
  0x55   : > { %v2280_v13 = vpack.c.bf16 %v472_v11, %v470_v10  ;;  %v2282_v16 = vpack.c.bf16 %v471_v15, %v469_v14  ;;  %v474_v17 = vld [vmem:[#allocation2 + $0x1a8] sm:$0xff]  ;;  %v476_v18 = vld [vmem:[#allocation2 + $0x1b8] sm:$0xff]  ;;  %v473_v20 = vld [vmem:[#allocation2 + $0x1a0] sm:$0xff] }
  0x56   : > { %v2284_v19 = vpack.c.bf16 %v476_v18, %v474_v17  ;;  %v475_v21 = vld [vmem:[#allocation2 + $0x1b0] sm:$0xff]  ;;  %v478_v23 = vld [vmem:[#allocation2 + $0x1c8] sm:$0xff]  ;;  %v480_v24 = vld [vmem:[#allocation2 + $0x1d8] sm:$0xff] }
  0x57   : > { %2251 = vmatpush1.bf16.msra.mxu1 %v2250_v33  ;;  %v2286_v22 = vpack.c.bf16 %v475_v21, %v473_v20  ;;  %v2288_v25 = vpack.c.bf16 %v480_v24, %v478_v23  ;;  %v477_v26 = vld [vmem:[#allocation2 + $0x1c0] sm:$0xff]  ;;  %v479_v27 = vld [vmem:[#allocation2 + $0x1d0] sm:$0xff]  ;;  %v482_v30 = vld [vmem:[#allocation2 + $0x1e8] sm:$0xff] }
  0x58   : > { %2253 = vmatprep.subr.bf16.mxu1 %v2252_v34  ;;  %v2290_v29 = vpack.c.bf16 %v479_v27, %v477_v26  ;;  %v484_v31 = vld [vmem:[#allocation2 + $0x1f8] sm:$0xff]  ;;  %v481_v32 = vld [vmem:[#allocation2 + $0x1e0] sm:$0xff]  ;;  %v483_v34 = vld [vmem:[#allocation2 + $0x1f0] sm:$0xff] }
  0x59   : > { %v2292_v33 = vpack.c.bf16 %v484_v31, %v482_v30  ;;  %v2294_v35 = vpack.c.bf16 %v483_v34, %v481_v32 }
  0x5b   : > { %2255 = vmatpush1.bf16.msra.mxu1 %v2254_v39 }
  0x5c   : > { %2257 = vmatprep.subr.bf16.mxu1 %v2256_v40 }
  0x5f   : > { %2259 = vmatpush1.bf16.msra.mxu1 %v2258_v45 }
  0x60   : > { %2261 = vmatprep.subr.bf16.mxu1 %v2260_v46 }
  0x63   : > { %2263 = vmatpush1.bf16.msra.mxu1 %v2262_v51 }
  0x64   : > { %2265 = vmatprep.subr.bf16.mxu1 %v2264_v52 }
  0x67   : > { %2267 = vmatpush1.bf16.msra.mxu1 %v2266_v57 }
  0x68   : > { %2269 = vmatprep.subr.bf16.mxu1 %v2268_v58 }
  0x6b   : > { %2271 = vmatpush1.bf16.msra.mxu1 %v2270_v63 }
  0x6c   : > { %2273 = vmatprep.subr.bf16.mxu1 %v2272_v1 }
  0x6f   : > { %2275 = vmatpush1.bf16.msra.mxu1 %v2274_v6 }
  0x70   : > { %2277 = vmatprep.subr.bf16.mxu1 %v2276_v7 }
  0x73   : > { %2279 = vmatpush1.bf16.msra.mxu1 %v2278_v12 }
  0x74   : > { %2281 = vmatprep.subr.bf16.mxu1 %v2280_v13 }
  0x77   : > { %2283 = vmatpush1.bf16.msra.mxu1 %v2282_v16 }
  0x78   : > { %2285 = vmatprep.subr.bf16.mxu1 %v2284_v19 }
  0x7b   : > { %2287 = vmatpush1.bf16.msra.mxu1 %v2286_v22 }
  0x7c   : > { %2289 = vmatprep.subr.bf16.mxu1 %v2288_v25 }
  0x7f   : > { %2291 = vmatpush1.bf16.msra.mxu1 %v2290_v29 }
  0x80   : > { %2293 = vmatprep.subr.bf16.mxu1 %v2292_v33 }
  0x83   : > { %2295 = vmatpush1.bf16.msra.mxu1 %v2294_v35 }
  0x84   : > { %2296 = vmatprep.subr.bf16.mxu1 %v3138_v54 }
  0xbb   : > { %v394_v28 = vpop.permute.xlu0 %393 }
  0xbf   : > { %v396_v36 = vpop.permute.xlu0 %395 }
  0xc0   : > { %v398_v37 = vsel %vm397_vm0, %v394_v28, %v396_v36  ;;  %v401_v38 = vsel %vm397_vm0, %v396_v36, %v394_v28 }
  0xc1   : > { %v403_v39 = vcombine.low %v398_v37, %v401_v38 }
  0xc3   : > { %v405_v40 = vmax.f32 %v3312_v0, %v403_v39 }
  0xc5   : > { %408 = vrot.lane.b32.xlu1 %v405_v40, %s3134_s30  ;;  %v407_v41 = vcombine.high %v405_v40, %v405_v40 }
  0xc9   : > { %410 = vrot.lane.b32.xlu1 %v407_v41, %s3134_s30 }
 0x137   : > { %v409_v42 = vpop.permute.xlu1 %408 }
 0x13b   : > { %v411_v43 = vpop.permute.xlu1 %410 }
 0x13c   : > { %v413_v44 = vsel %vm412_vm1, %v409_v42, %v411_v43  ;;  %v416_v45 = vsel %vm412_vm1, %v411_v43, %v409_v42 }
 0x13d   : > { %v418_v46 = vcombine.low %v413_v44, %v416_v45 }
 0x13f   : > { %v420_v47 = vmax.f32 %v405_v40, %v418_v46 }
 0x141   : > { %v486_v48 = vcombine.high %v420_v47, %v420_v47 }
 0x143   : > { %552 = vmatprep.mubr.f32.mxu1 %v486_v48 }
 0x144   : > { %553 = vmatmul.mubr.f32.vlgmr.msra.gmra.mrb[0].mxu1 %v420_v47 }
 0x217   : > { %v3326_v49 = vpop.f32.mrb[0].mxu1 }
 0x218   : > { %v561_v0 = vrot.slane %v3326_v49, 4  ;;  %v3329_v50 = vpop.f32.mrb[1].mxu1 }
 0x219   : > { %v562_v51 = vrot.slane %v3329_v50, 4  ;;  %v2594_v52 = vpack.i.bf16 %v3329_v50, %v3326_v49 }
 0x21b   : > { %2595 = vrot.lane.b32.xlu0 %v2594_v52, %s3135_s11  ;;  %2585 = vrot.lane.b32.xlu1 %v2594_v52, %s3136_s12  ;;  %v2609_v53 = vpack.i.bf16 %v562_v51, %v561_v0 }
 0x21f   : > { %2590 = vrot.lane.b32.xlu1 %v2594_v52, %s3137_s15  ;;  %2610 = vrot.lane.b32.xlu0 %v2609_v53, %s3133_s29 }
 0x223   : > { %2600 = vrot.lane.b32.xlu1 %v2594_v52, %s3139_s18  ;;  %2615 = vrot.lane.b32.xlu0 %v2609_v53, %s3140_s21 }
 0x227   : > { %2605 = vrot.lane.b32.xlu1 %v2594_v52, %s3141_s22  ;;  %2620 = vrot.lane.b32.xlu0 %v2609_v53, %s3134_s30 }
 0x22b   : > { %2625 = vrot.lane.b32.xlu1 %v2609_v53, %s3142_s23  ;;  %2640 = vrot.lane.b32.xlu0 %v2609_v53, %s3806_s24  ;;  %s3811_s24 = smov 106  }
 0x22f   : > { %2630 = vrot.lane.b32.xlu1 %v2594_v52, %s3802_s25  ;;  %2645 = vrot.lane.b32.xlu0 %v2609_v53, %s3803_s16  ;;  %s3817_s25 = smov 123   ;;  %s3829_s16 = smov 99  }
 0x233   : > { %2635 = vrot.lane.b32.xlu1 %v2594_v52, %s3804_s26  ;;  %2650 = vrot.lane.b32.xlu0 %v2609_v53, %s3805_s27  ;;  %s3807_s26 = smov 107   ;;  %s3818_s27 = smov 122  }
 0x237   : > { %2660 = vrot.lane.b32.xlu1 %v2609_v53, %s3148_s19  ;;  %2655 = vrot.lane.b32.xlu0 %v2609_v53, %s3149_s20 }
 0x23b   : > { %2670 = vrot.lane.b32.xlu1 %v2594_v52, %s3150_s28  ;;  %2665 = vrot.lane.b32.xlu0 %v2594_v52, %s3151_s17 }
 0x23f   : > { %2680 = vrot.lane.b32.xlu1 %v2609_v53, %s3817_s25  ;;  %2675 = vrot.lane.b32.xlu0 %v2609_v53, %s3829_s16  ;;  %s3162_s16 = smov 51  }
 0x243   : > { %2690 = vrot.lane.b32.xlu1 %v2594_v52, %s3807_s26  ;;  %2685 = vrot.lane.b32.xlu0 %v2594_v52, %s3818_s27  ;;  %s3820_s26 = smov 94  }
 0x247   : > { %2695 = vrot.lane.b32.xlu0 %v2609_v53, %s3811_s24  ;;  %s3827_s24 = smov 60  }
 0x28d   : > { %v2596_v55 = vpop.permute.xlu0 %2595  ;;  %v2586_v56 = vpop.permute.xlu1 %2585 }
 0x28e   : > { %v3359_v61 = vunpack.i.h.bf16 %v2586_v56  ;;  %v2587_v62 = vunpack.i.l.bf16 %v2586_v56  ;;  %v2598_v7 = vunpack.i.h.bf16 %v2596_v55  ;;  %v2597_v8 = vunpack.i.l.bf16 %v2596_v55 }
 0x290   : > { %v3373_v11 = vsel %vm573_vm4, %v2587_v62, %v3359_v61  ;;  %v692_v20 = vsel %vm691_vm5, %v2597_v8, %v2598_v7 }
 0x291   : > { %v2591_v57 = vpop.permute.xlu1 %2590  ;;  %v2611_v58 = vpop.permute.xlu0 %2610 }
 0x292   : > { %v2613_v59 = vunpack.i.h.bf16 %v2611_v58  ;;  %v2612_v60 = vunpack.i.l.bf16 %v2611_v58  ;;  %v2593_v21 = vunpack.i.h.bf16 %v2591_v57  ;;  %v2592_v22 = vunpack.i.l.bf16 %v2591_v57 }
 0x294   : > { %v567_v63 = vsel %vm397_vm0, %v2612_v60, %v2613_v59  ;;  %v718_v1 = vsel %vm666_vm2, %v3329_v50, %v2613_v59  ;;  %v3402_v39 = vsel %vm587_vm7, %v2592_v22, %v2593_v21 }
 0x295   : > { %v3364_v2 = vpop.permute.xlu1 %2600  ;;  %v2616_v3 = vpop.permute.xlu0 %2615  ;;  %v667_v4 = vsel %vm666_vm2, %v3326_v49, %v567_v63 }
 0x296   : > { %v2618_v5 = vunpack.i.h.bf16 %v2616_v3  ;;  %v2617_v6 = vunpack.i.l.bf16 %v2616_v3  ;;  %v3368_v9 = vpack.i.bf16 %v718_v1, %v667_v4  ;;  %v2603_v25 = vunpack.i.h.bf16 %v3364_v2 }
 0x297   : > { %v2602_v26 = vunpack.i.l.bf16 %v3364_v2 }
 0x298   : > { %v581_v10 = vsel %vm580_vm3, %v2617_v6, %v2618_v5  ;;  %v719_v12 = vsel %vm666_vm2, %v3359_v61, %v2618_v5  ;;  %2700 = vrot.lane.b32.xlu1 %v3368_v9, %s3820_s26 }
 0x299   : > { %v2606_v13 = vpop.permute.xlu1 %2605  ;;  %v2621_v14 = vpop.permute.xlu0 %2620  ;;  %v668_v15 = vsel %vm666_vm2, %v3373_v11, %v581_v10  ;;  %v615_v44 = vsel %vm614_vm6, %v2602_v26, %v2603_v25 }
 0x29a   : > { %v2623_v16 = vunpack.i.h.bf16 %v2621_v14  ;;  %v2622_v17 = vunpack.i.l.bf16 %v2621_v14  ;;  %v2704_v18 = vpack.i.bf16 %v719_v12, %v668_v15  ;;  %v2297_v19 = vpack.c.bf16 %v668_v15, %v667_v4 }
 0x29b   : > { %v2608_v34 = vunpack.i.h.bf16 %v2606_v13  ;;  %v2607_v35 = vunpack.i.l.bf16 %v2606_v13 }
 0x29c   : > { %v3383_v23 = vsel %vm412_vm1, %v2622_v17, %v2623_v16  ;;  %v723_v24 = vsel %vm666_vm2, %v2598_v7, %v2623_v16  ;;  %2705 = vrot.lane.b32.xlu0 %v2704_v18, %s3820_s26  ;;  %2298 = vmatpush1.bf16.msra.mxu1 %v2297_v19 }
 0x29d   : > { %v2626_v27 = vpop.permute.xlu1 %2625  ;;  %v2641_v28 = vpop.permute.xlu0 %2640  ;;  %v722_v29 = vsel %vm666_vm2, %v692_v20, %v3383_v23  ;;  %2299 = vmatprep.subr.bf16.mxu1 %v3138_v54  ;;  %v629_v47 = vsel %vm3814_vm10, %v2607_v35, %v2608_v34  ;;  %vm3819_vm10 = vcmask 998400  }
 0x29e   : > { %v3391_v30 = vunpack.i.h.bf16 %v2626_v27  ;;  %v2627_v31 = vunpack.i.l.bf16 %v2626_v27  ;;  %v2643_v32 = vunpack.i.h.bf16 %v2641_v28  ;;  %v2642_v33 = vunpack.i.l.bf16 %v2641_v28 }
 0x29f   : > { %v3394_v36 = vpack.i.bf16 %v723_v24, %v722_v29 }
 0x2a0   : > { %v3398_v37 = vsel %vm683_vm8, %v2627_v31, %v3391_v30  ;;  %v622_v38 = vsel %vm621_vm9, %v2642_v33, %v2643_v32  ;;  %v721_v40 = vsel %vm666_vm2, %v2593_v21, %v3391_v30  ;;  %v724_v51 = vsel %vm666_vm2, %v2603_v25, %v2643_v32 }
 0x2a1   : > { %2715 = vrot.lane.b32.xlu0 %v3394_v36, %s3820_s26  ;;  %v2631_v41 = vpop.permute.xlu1 %2630  ;;  %v2646_v42 = vpop.permute.xlu0 %2645  ;;  %v720_v43 = vsel %vm666_vm2, %v3402_v39, %v3398_v37  ;;  %v3414_v0 = vsel %vm666_vm2, %v615_v44, %v622_v38 }
 0x2a2   : > { %v2648_v45 = vunpack.i.h.bf16 %v2646_v42  ;;  %v2647_v46 = vunpack.i.l.bf16 %v2646_v42  ;;  %v2709_v48 = vpack.i.bf16 %v721_v40, %v720_v43  ;;  %v2633_v52 = vunpack.i.h.bf16 %v2631_v41 }
 0x2a3   : > { %v2632_v53 = vunpack.i.l.bf16 %v2631_v41  ;;  %v3425_v3 = vpack.i.bf16 %v724_v51, %v3414_v0 }
 0x2a4   : > { %v636_v55 = vsel %vm3808_vm11, %v2647_v46, %v2648_v45  ;;  %v725_v56 = vsel %vm666_vm2, %v2608_v34, %v2648_v45  ;;  %2710 = vrot.lane.b32.xlu1 %v2709_v48, %s3820_s26  ;;  %vm3810_vm11 = vcmask 793600  }
 0x2a5   : > { %v2636_v57 = vpop.permute.xlu1 %2635  ;;  %v2651_v58 = vpop.permute.xlu0 %2650  ;;  %v3421_v59 = vsel %vm666_vm2, %v629_v47, %v636_v55  ;;  %v657_v4 = vsel %vm3812_vm12, %v2632_v53, %v2633_v52  ;;  %vm3815_vm12 = vcmask 809984  }
 0x2a6   : > { %v2653_v60 = vunpack.i.h.bf16 %v2651_v58  ;;  %v2652_v62 = vunpack.i.l.bf16 %v2651_v58  ;;  %v2638_v63 = vunpack.i.h.bf16 %v2636_v57  ;;  %v2637_v1 = vunpack.i.l.bf16 %v2636_v57 }
 0x2a7   : > { %v2724_v2 = vpack.i.bf16 %v725_v56, %v3421_v59 }
 0x2a8   : > { %v664_v5 = vsel %vm3809_vm13, %v2652_v62, %v2653_v60  ;;  %v728_v6 = vsel %vm666_vm2, %v2633_v52, %v2653_v60  ;;  %2720 = vrot.lane.b32.xlu1 %v3425_v3, %s3820_s26  ;;  %v705_v16 = vsel %vm3813_vm14, %v2637_v1, %v2638_v63  ;;  %vm741_vm13 = vcmask 941056  }
 0x2a9   : > { %2725 = vrot.lane.b32.xlu0 %v2724_v2, %s3820_s26  ;;  %v2661_v7 = vpop.permute.xlu1 %2660  ;;  %v2656_v8 = vpop.permute.xlu0 %2655  ;;  %v3434_v10 = vsel %vm666_vm2, %v657_v4, %v664_v5  ;;  %vm3816_vm14 = vcmask 1006592  }
 0x2aa   : > { %v2663_v12 = vunpack.i.h.bf16 %v2661_v7  ;;  %v2662_v13 = vunpack.i.l.bf16 %v2661_v7  ;;  %v2658_v14 = vunpack.i.h.bf16 %v2656_v8  ;;  %v2657_v15 = vunpack.i.l.bf16 %v2656_v8 }
 0x2ab   : > { %v2734_v17 = vpack.i.bf16 %v728_v6, %v3434_v10  ;;  %v3159_v6 = vmov 0  }
 0x2ac   : > { %v734_v18 = vsel %vm733_vm15, %v2662_v13, %v2663_v12  ;;  %v713_v19 = vsel %vm3810_vm11, %v2657_v15, %v2658_v14  ;;  %v762_v20 = vsel %vm666_vm2, %v3359_v61, %v2663_v12  ;;  %v727_v21 = vsel %vm666_vm2, %v2638_v63, %v2658_v14  ;;  %2779 = vset.pattern.permute.xlu1 %v3159_v6 }
 0x2ad   : > { %2735 = vrot.lane.b32.xlu0 %v2734_v17, %s3820_s26  ;;  %v2671_v22 = vpop.permute.xlu1 %2670  ;;  %v2666_v24 = vpop.permute.xlu0 %2665  ;;  %v761_v25 = vsel %vm666_vm2, %v3373_v11, %v734_v18  ;;  %v726_v26 = vsel %vm666_vm2, %v705_v16, %v713_v19  ;;  %vm749_vm11 = vcmask 818176  }
 0x2ae   : > { %v2668_v27 = vunpack.i.h.bf16 %v2666_v24  ;;  %v2667_v28 = vunpack.i.l.bf16 %v2666_v24  ;;  %v2673_v29 = vunpack.i.h.bf16 %v2671_v22  ;;  %v2672_v31 = vunpack.i.l.bf16 %v2671_v22  ;;  %3055 = vset.pattern.permute.xlu0 %v3159_v6 }
 0x2af   : > { %v2744_v32 = vpack.i.bf16 %v762_v20, %v761_v25  ;;  %v2729_v33 = vpack.i.bf16 %v727_v21, %v726_v26 }
 0x2b0   : > { %v742_v61 = vsel %vm741_vm13, %v2667_v28, %v2668_v27  ;;  %v750_v42 = vsel %vm749_vm11, %v2672_v31, %v2673_v29  ;;  %v764_v46 = vsel %vm666_vm2, %v2668_v27, %v3391_v30 }
 0x2b1   : > { %2745 = vrot.lane.b32.xlu0 %v2744_v32, %s3827_s24  ;;  %2730 = vrot.lane.b32.xlu1 %v2729_v33, %s3820_s26  ;;  %v2681_v34 = vpop.permute.xlu1 %2680  ;;  %v2676_v11 = vpop.permute.xlu0 %2675  ;;  %v763_v45 = vsel %vm666_vm2, %v742_v61, %v3398_v37  ;;  %s3825_s26 = smov 26  }
 0x2b2   : > { %v2683_v35 = vunpack.i.h.bf16 %v2681_v34  ;;  %v2682_v38 = vunpack.i.l.bf16 %v2681_v34  ;;  %v2678_v40 = vunpack.i.h.bf16 %v2676_v11  ;;  %v2677_v41 = vunpack.i.l.bf16 %v2676_v11 }
 0x2b3   : > { %v2749_v37 = vpack.i.bf16 %v764_v46, %v763_v45 }
 0x2b4   : > { %v758_v43 = vsel %vm3815_vm12, %v2677_v41, %v2678_v40  ;;  %v766_v44 = vsel %vm666_vm2, %v2673_v29, %v2678_v40  ;;  %v595_v51 = vsel %vm3816_vm14, %v2682_v38, %v2683_v35  ;;  %vm3822_vm12 = vcmask 867328  }
 0x2b5   : > { %2755 = vrot.lane.b32.xlu0 %v3394_v36, %s3827_s24  ;;  %2740 = vrot.lane.b32.xlu1 %v3368_v9, %s3827_s24  ;;  %v2686_v47 = vpop.permute.xlu0 %2685  ;;  %v765_v48 = vsel %vm666_vm2, %v750_v42, %v758_v43  ;;  %v2691_v52 = vpop.permute.xlu1 %2690  ;;  %v669_v36 = vsel %vm666_vm2, %v3402_v39, %v595_v51  ;;  %vm3823_vm14 = vcmask 875520   ;;  %v894_v39 = vld [vmem:[%s3792_s4 + $0x8] sm:$0xff] }
 0x2b6   : > { %v2688_v53 = vunpack.i.h.bf16 %v2686_v47  ;;  %v2687_v55 = vunpack.i.l.bf16 %v2686_v47  ;;  %v2764_v56 = vpack.i.bf16 %v766_v44, %v765_v48  ;;  %v2693_v30 = vunpack.i.h.bf16 %v2691_v52 }
 0x2b7   : > { %v2692_v60 = vunpack.i.l.bf16 %v2691_v52 }
 0x2b8   : > { %v602_v57 = vsel %vm3819_vm10, %v2687_v55, %v2688_v53  ;;  %vm901_vm10 = vcmask 556032  }
 0x2b9   : > { %2765 = vrot.lane.b32.xlu0 %v2764_v56, %s3827_s24  ;;  %2750 = vrot.lane.b32.xlu1 %v2749_v37, %s3827_s24  ;;  %v2696_v9 = vpop.permute.xlu0 %2695  ;;  %v670_v58 = vsel %vm666_vm2, %v602_v57, %v3383_v23  ;;  %v2303_v23 = vpack.c.bf16 %v3421_v59, %v3414_v0  ;;  %v643_v4 = vsel %vm3823_vm14, %v2692_v60, %v2693_v30  ;;  %v895_v59 = vld [vmem:[%s3793_s5] sm:$0xff]  ;;  %vm891_vm14 = vcmask 211968  }
 0x2ba   : > { %v2698_v62 = vunpack.i.h.bf16 %v2696_v9  ;;  %v2697_v63 = vunpack.i.l.bf16 %v2696_v9  ;;  %v2300_v1 = vpack.c.bf16 %v670_v58, %v669_v36  ;;  %2153 = vmatprep.mubr.msk.f32.mxu1 %vm901_vm10, %v894_v39  ;;  %vm3830_vm10 = vcmask 769024  }
 0x2bc   : > { %v650_v2 = vsel %vm3822_vm12, %v2697_v63, %v2698_v62  ;;  %2301 = vmatpush1.bf16.msra.mxu1 %v2300_v1  ;;  %vm3824_vm12 = vcmask 490496  }
 0x2bd   : > { %2775 = vrot.lane.b32.xlu0 %v2734_v17, %s3827_s24  ;;  %2760 = vrot.lane.b32.xlu1 %v3425_v3, %s3827_s24  ;;  %v673_v5 = vsel %vm666_vm2, %v643_v4, %v650_v2 }
 0x2be   : > { %2302 = vmatprep.subr.bf16.mxu1 %v3138_v54  ;;  %v2306_v0 = vpack.c.bf16 %v3434_v10, %v673_v5 }
 0x2c0   : > { %2304 = vmatpush1.bf16.msra.mxu1 %v2303_v23 }
 0x2c1   : > { %889 = vrot.lane.b32.xlu0 %v3329_v50, %s3825_s26  ;;  %2770 = vrot.lane.b32.xlu1 %v2729_v33, %s3827_s24  ;;  %s3848_s24 = smov 106  }
 0x2c2   : > { %2305 = vmatprep.subr.bf16.mxu1 %v3138_v54 }
 0x2c4   : > { %2307 = vmatpush1.bf16.msra.mxu1 %v2306_v0 }
 0x2c5   : > { %887 = vrot.lane.b32.xlu1 %v3326_v49, %s3825_s26  ;;  %2308 = vmatprep.subr.bf16.mxu1 %v3138_v54 }
 0x2c9   : > { %898 = vperm.xlu1 %2779, %v895_v59  }
 0x30a   : > { %v2701_v3 = vpop.permute.xlu1 %2700 }
 0x30b   : > { %v2703_v7 = vunpack.i.h.bf16 %v2701_v3  ;;  %v2702_v50 = vunpack.i.l.bf16 %v2701_v3 }
 0x30d   : > { %v816_v10 = vsel %vm3830_vm10, %v2702_v50, %v2703_v7 }
 0x30e   : > { %v2706_v8 = vpop.permute.xlu0 %2705 }
 0x30f   : > { %v2708_v12 = vunpack.i.h.bf16 %v2706_v8  ;;  %v2707_v13 = vunpack.i.l.bf16 %v2706_v8 }
 0x311   : > { %v817_v14 = vsel %vm3830_vm10, %v2707_v13, %v2708_v12 }
 0x312   : > { %v2309_v15 = vpack.c.bf16 %v817_v14, %v816_v10 }
 0x313   : > { %v2716_v49 = vpop.permute.xlu0 %2715 }
 0x314   : > { %2310 = vmatpush1.bf16.msra.mxu1 %v2309_v15  ;;  %v2718_v16 = vunpack.i.h.bf16 %v2716_v49  ;;  %v2717_v17 = vunpack.i.l.bf16 %v2716_v49 }
 0x315   : > { %2311 = vmatprep.subr.bf16.mxu1 %v3138_v54 }
 0x316   : > { %v2711_v18 = vpop.permute.xlu1 %2710  ;;  %v819_v21 = vsel %vm3830_vm10, %v2717_v17, %v2718_v16  ;;  %v3161_v16 = vmov 0.0  }
 0x317   : > { %v2713_v19 = vunpack.i.h.bf16 %v2711_v18  ;;  %v2712_v20 = vunpack.i.l.bf16 %v2711_v18  ;;  %v893_v18 = vld [vmem:[%s3792_s4] sm:$0xff] }
 0x319   : > { %v818_v22 = vsel %vm3830_vm10, %v2712_v20, %v2713_v19 }
 0x31a   : > { %v2312_v24 = vpack.c.bf16 %v819_v21, %v818_v22  ;;  %v2721_v26 = vpop.permute.xlu1 %2720 }
 0x31b   : > { %v2726_v25 = vpop.permute.xlu0 %2725  ;;  %v2723_v29 = vunpack.i.h.bf16 %v2721_v26  ;;  %v2722_v31 = vunpack.i.l.bf16 %v2721_v26  ;;  %v2154_v26 = vld [vmem:[%s3790_s2] ss:$0 sm:$0xff] }
 0x31c   : > { %v2728_v27 = vunpack.i.h.bf16 %v2726_v25  ;;  %v2727_v28 = vunpack.i.l.bf16 %v2726_v25  ;;  %2313 = vmatpush1.bf16.msra.mxu1 %v2312_v24 }
 0x31d   : > { %v820_v33 = vsel %vm3830_vm10, %v2722_v31, %v2723_v29  ;;  %2314 = vmatprep.subr.bf16.mxu1 %v3138_v54 }
 0x31e   : > { %v821_v32 = vsel %vm3830_vm10, %v2727_v28, %v2728_v27 }
 0x31f   : > { %v2315_v61 = vpack.c.bf16 %v821_v32, %v820_v33  ;;  %v2736_v34 = vpop.permute.xlu0 %2735 }
 0x320   : > { %v2738_v11 = vunpack.i.h.bf16 %v2736_v34  ;;  %v2737_v35 = vunpack.i.l.bf16 %v2736_v34 }
 0x321   : > { %2316 = vmatpush1.bf16.msra.mxu1 %v2315_v61 }
 0x322   : > { %2317 = vmatprep.subr.bf16.mxu1 %v3138_v54  ;;  %v823_v43 = vsel %vm3830_vm10, %v2737_v35, %v2738_v11 }
 0x323   : > { %v2746_v38 = vpop.permute.xlu0 %2745  ;;  %v2731_v40 = vpop.permute.xlu1 %2730 }
 0x324   : > { %v2733_v41 = vunpack.i.h.bf16 %v2731_v40  ;;  %v2732_v42 = vunpack.i.l.bf16 %v2731_v40  ;;  %v2748_v44 = vunpack.i.h.bf16 %v2746_v38  ;;  %v2747_v45 = vunpack.i.l.bf16 %v2746_v38 }
 0x326   : > { %v822_v46 = vsel %vm3830_vm10, %v2732_v42, %v2733_v41  ;;  %v872_v55 = vsel %vm3824_vm12, %v2747_v45, %v2748_v44  ;;  %vm992_vm10 = vcmask 416768  }
 0x327   : > { %v2318_v47 = vpack.c.bf16 %v823_v43, %v822_v46  ;;  %v2756_v48 = vpop.permute.xlu0 %2755  ;;  %v2741_v51 = vpop.permute.xlu1 %2740 }
 0x328   : > { %v2743_v52 = vunpack.i.h.bf16 %v2741_v51  ;;  %v2742_v53 = vunpack.i.l.bf16 %v2741_v51  ;;  %v2758_v56 = vunpack.i.h.bf16 %v2756_v48  ;;  %v2757_v37 = vunpack.i.l.bf16 %v2756_v48 }
 0x329   : > { %2319 = vmatpush1.bf16.msra.mxu1 %v2318_v47 }
 0x32a   : > { %v871_v57 = vsel %vm3824_vm12, %v2742_v53, %v2743_v52  ;;  %2320 = vmatprep.subr.bf16.mxu1 %v3138_v54  ;;  %v874_v62 = vsel %vm3824_vm12, %v2757_v37, %v2758_v56 }
 0x32b   : > { %v2321_v30 = vpack.c.bf16 %v872_v55, %v871_v57  ;;  %v2766_v9 = vpop.permute.xlu0 %2765  ;;  %v2751_v36 = vpop.permute.xlu1 %2750 }
 0x32c   : > { %v2753_v58 = vunpack.i.h.bf16 %v2751_v36  ;;  %v2752_v60 = vunpack.i.l.bf16 %v2751_v36  ;;  %v2768_v63 = vunpack.i.h.bf16 %v2766_v9  ;;  %v2767_v1 = vunpack.i.l.bf16 %v2766_v9 }
 0x32d   : > { %2322 = vmatpush1.bf16.msra.mxu1 %v2321_v30 }
 0x32e   : > { %v873_v2 = vsel %vm3824_vm12, %v2752_v60, %v2753_v58  ;;  %2323 = vmatprep.subr.bf16.mxu1 %v3138_v54  ;;  %v876_v0 = vsel %vm3824_vm12, %v2767_v1, %v2768_v63 }
 0x32f   : > { %v2324_v39 = vpack.c.bf16 %v874_v62, %v873_v2  ;;  %v2776_v23 = vpop.permute.xlu0 %2775  ;;  %v2761_v4 = vpop.permute.xlu1 %2760 }
 0x330   : > { %v2763_v5 = vunpack.i.h.bf16 %v2761_v4  ;;  %v2762_v6 = vunpack.i.l.bf16 %v2761_v4  ;;  %v2778_v59 = vunpack.i.h.bf16 %v2776_v23  ;;  %v2777_v3 = vunpack.i.l.bf16 %v2776_v23 }
 0x331   : > { %2325 = vmatpush1.bf16.msra.mxu1 %v2324_v39 }
 0x332   : > { %v875_v7 = vsel %vm3824_vm12, %v2762_v6, %v2763_v5  ;;  %2326 = vmatprep.subr.bf16.mxu1 %v3138_v54  ;;  %v878_v10 = vsel %vm3824_vm12, %v2777_v3, %v2778_v59 }
 0x333   : > { %v2327_v50 = vpack.c.bf16 %v876_v0, %v875_v7  ;;  %v2771_v8 = vpop.permute.xlu1 %2770  ;;  %v890_v17 = vpop.permute.xlu0 %889 }
 0x334   : > { %v2773_v12 = vunpack.i.h.bf16 %v2771_v8  ;;  %v2772_v13 = vunpack.i.l.bf16 %v2771_v8 }
 0x335   : > { %2328 = vmatpush1.bf16.msra.mxu1 %v2327_v50 }
 0x336   : > { %v877_v14 = vsel %vm3824_vm12, %v2772_v13, %v2773_v12  ;;  %2329 = vmatprep.subr.bf16.mxu1 %v3138_v54 }
 0x337   : > { %v2330_v15 = vpack.c.bf16 %v878_v10, %v877_v14  ;;  %v888_v49 = vpop.permute.xlu1 %887 }
 0x338   : > { %v892_v19 = vsel %vm891_vm14, %v888_v49, %v890_v17 }
 0x339   : > { %2331 = vmatpush1.bf16.msra.mxu1 %v2330_v15 }
 0x33a   : > { %955 = vmatprep.subr.mxu1 %v3161_v16 }
 0x33d   : > { %2152 = vmatpush1.msk.msra.mxu1 %vm666_vm2, %v892_v19  ;;  %vm3852_vm2 = vcmask 801792  }
 0x33e   : > { %972 = vmatmul.mubr.f32.vlgmr.msra.gmra.mrb[2].mxu1 %v893_v18 }
 0x348   : > { %v899_v20 = vpop.permute.xlu1 %898 }
 0x411   : > { %v973_v21 = vpop.f32.mrb[2].mxu1 }
 0x412   : > { %v974_v22 = vadd.f32 %v973_v21, %v899_v20  ;;  %v975_v24 = vpop.f32.mrb[3].mxu1 }
 0x414   : > { %vm977_vm12 = vcmp.ge.f32.partialorder %v974_v22, 0.0  ;;  %v978_v25 = vmul.f32 0.01, %v974_v22 }
 0x416   : > { %v979_v27 = vsel %vm977_vm12, %v974_v22, %v978_v25  ;;  %vm3163_vm12 = vmmov 1  }
 0x417   : > { %v987_v28 = vmul.f32 %v2154_v26, %v979_v27 }
 0x419   : > { %989 = vrot.lane.b32.xlu0 %v987_v28, %s3162_s16  ;;  %s3849_s16 = smov 107  }
 0x48b   : > { %v3525_v29 = vpop.permute.xlu0 %989 }
 0x48c   : > { %v3529_v31 = vsel %vm992_vm10, 0.0, %v3525_v29  ;;  %v3533_v32 = vsel %vm992_vm10, %v3525_v29, 0.0 }
 0x48d   : > { %v2785_v33 = vpack.i.bf16 %v3533_v32, %v3529_v31 }
 0x48f   : > { %2786 = vrot.lane.b32.xlu0 %v2785_v33, %s3136_s12  ;;  %2781 = vrot.lane.b32.xlu1 %v2785_v33, %s3133_s29  ;;  %s3838_s12 = smov 110   ;;  %s3839_s29 = smov 98  }
 0x493   : > { %2796 = vrot.lane.b32.xlu0 %v2785_v33, %s3137_s15  ;;  %2791 = vrot.lane.b32.xlu1 %v2785_v33, %s3140_s21  ;;  %s3840_s15 = smov 108   ;;  %s3841_s21 = smov 96  }
 0x497   : > { %2806 = vrot.lane.b32.xlu0 %v2785_v33, %s3148_s19  ;;  %2801 = vrot.lane.b32.xlu1 %v2785_v33, %s3142_s23  ;;  %s3847_s23 = smov 123  }
 0x49b   : > { %2816 = vrot.lane.b32.xlu0 %v2785_v33, %s3135_s11  ;;  %2811 = vrot.lane.b32.xlu1 %v2785_v33, %s3134_s30  ;;  %s3842_s11 = smov 99   ;;  %s3843_s30 = smov 94  }
 0x49f   : > { %2826 = vrot.lane.b32.xlu0 %v2785_v33, %s3139_s18  ;;  %2821 = vrot.lane.b32.xlu1 %v2785_v33, %s3151_s17  ;;  %s3844_s18 = smov 95   ;;  %s3845_s17 = smov 60  }
 0x4a3   : > { %2836 = vrot.lane.b32.xlu0 %v2785_v33, %s3141_s22  ;;  %2831 = vrot.lane.b32.xlu1 %v2785_v33, %s3838_s12  ;;  %s3846_s22 = smov 122  }
 0x4a7   : > { %2846 = vrot.lane.b32.xlu0 %v2785_v33, %s3839_s29  ;;  %2841 = vrot.lane.b32.xlu1 %v2785_v33, %s3840_s15 }
 0x4ab   : > { %2856 = vrot.lane.b32.xlu0 %v2785_v33, %s3150_s28  ;;  %2851 = vrot.lane.b32.xlu1 %v2785_v33, %s3149_s20  ;;  %s3857_s20 = smov 26   ;;  %s3892_s28 = sshll.u32 %s3894_s14, 3 }
 0x4ac   : > { %s389_s12 = scalar_lea.vmem %s3798_s10, %s3892_s28 }
 0x4af   : > { %2866 = vrot.lane.b32.xlu0 %v2785_v33, %s3841_s21  ;;  %2861 = vrot.lane.b32.xlu1 %v2785_v33, %s3842_s11 }
 0x4b3   : > { %2876 = vrot.lane.b32.xlu0 %v2785_v33, %s3843_s30  ;;  %2871 = vrot.lane.b32.xlu1 %v2785_v33, %s3844_s18 }
 0x4b7   : > { %2881 = vrot.lane.b32.xlu0 %v2785_v33, %s3845_s17  ;;  %2891 = vrot.lane.b32.xlu1 %v2785_v33, %s3846_s22 }
 0x4bb   : > { %2886 = vrot.lane.b32.xlu0 %v2785_v33, %s3847_s23  ;;  %2901 = vrot.lane.b32.xlu1 %v2785_v33, %s3848_s24 }
 0x4bf   : > { %2896 = vrot.lane.b32.xlu0 %v2785_v33, %s3849_s16 }
 0x501   : > { %v2787_v61 = vpop.permute.xlu0 %2786  ;;  %v2782_v34 = vpop.permute.xlu1 %2781 }
 0x502   : > { %v2789_v11 = vunpack.i.h.bf16 %v2787_v61  ;;  %v2788_v35 = vunpack.i.l.bf16 %v2787_v61  ;;  %v2784_v38 = vunpack.i.h.bf16 %v2782_v34  ;;  %v2783_v40 = vunpack.i.l.bf16 %v2782_v34 }
 0x504   : > { %v3563_v41 = vsel %vm573_vm4, %v2788_v35, %v2789_v11  ;;  %v3566_v42 = vsel %vm397_vm0, %v2783_v40, %v2784_v38  ;;  %vm3850_vm0 = vcmask 891904   ;;  %vm3854_vm4 = vcmask 777216  }
 0x505   : > { %v2797_v43 = vpop.permute.xlu0 %2796  ;;  %v2792_v44 = vpop.permute.xlu1 %2791  ;;  %v2910_v45 = vpack.i.bf16 %v2789_v11, %v3563_v41  ;;  %v2905_v46 = vpack.i.bf16 %v2784_v38, %v3566_v42 }
 0x506   : > { %v2799_v47 = vunpack.i.h.bf16 %v2797_v43  ;;  %v2798_v48 = vunpack.i.l.bf16 %v2797_v43  ;;  %v2794_v51 = vunpack.i.h.bf16 %v2792_v44  ;;  %v2793_v52 = vunpack.i.l.bf16 %v2792_v44 }
 0x507   : > { %2911 = vrot.lane.b32.xlu0 %v2910_v45, %s3843_s30  ;;  %2906 = vrot.lane.b32.xlu1 %v2905_v46, %s3843_s30 }
 0x508   : > { %v3573_v53 = vsel %vm587_vm7, %v2798_v48, %v2799_v47  ;;  %v3576_v55 = vsel %vm580_vm3, %v2793_v52, %v2794_v51  ;;  %vm3853_vm3 = vcmask 785408   ;;  %vm1335_vm7 = vcmask 64512  }
 0x509   : > { %v2925_v56 = vpack.i.bf16 %v2799_v47, %v3573_v53  ;;  %v2915_v37 = vpack.i.bf16 %v2794_v51, %v3576_v55  ;;  %v2339_v57 = vpack.c.bf16 %v3576_v55, %v3563_v41  ;;  %v2807_v30 = vpop.permute.xlu0 %2806  ;;  %v2802_v9 = vpop.permute.xlu1 %2801 }
 0x50a   : > { %v2804_v36 = vunpack.i.h.bf16 %v2802_v9  ;;  %v2803_v58 = vunpack.i.l.bf16 %v2802_v9  ;;  %v2809_v60 = vunpack.i.h.bf16 %v2807_v30  ;;  %v2808_v1 = vunpack.i.l.bf16 %v2807_v30 }
 0x50b   : > { %2926 = vrot.lane.b32.xlu0 %v2925_v56, %s3843_s30  ;;  %2916 = vrot.lane.b32.xlu1 %v2915_v37, %s3843_s30 }
 0x50c   : > { %v1091_v23 = vsel %vm683_vm8, %v2803_v58, %v2804_v36  ;;  %v1111_v50 = vsel %vm733_vm15, %v2808_v1, %v2809_v60  ;;  %vm2155_vm8 = vmneg %vm992_vm10 }
 0x50d   : > { %v2817_v62 = vpop.permute.xlu0 %2816  ;;  %v2812_v63 = vpop.permute.xlu1 %2811  ;;  %v2930_v7 = vpack.i.bf16 %v2804_v36, %v1091_v23  ;;  %v2940_v13 = vpack.i.bf16 %v2809_v60, %v1111_v50 }
 0x50e   : > { %v2814_v2 = vunpack.i.h.bf16 %v2812_v63  ;;  %v2813_v39 = vunpack.i.l.bf16 %v2812_v63  ;;  %v2819_v5 = vunpack.i.h.bf16 %v2817_v62  ;;  %v2818_v6 = vunpack.i.l.bf16 %v2817_v62 }
 0x50f   : > { %2936 = vrot.lane.b32.xlu0 %v2910_v45, %s3845_s17  ;;  %2921 = vrot.lane.b32.xlu1 %v2905_v46, %s3845_s17 }
 0x510   : > { %v3588_v4 = vsel %vm412_vm1, %v2813_v39, %v2814_v2  ;;  %v1096_v49 = vsel %vm691_vm5, %v2818_v6, %v2819_v5  ;;  %vm3851_vm1 = vcmask 883712   ;;  %vm3855_vm5 = vcmask 793600  }
 0x511   : > { %v2827_v0 = vpop.permute.xlu0 %2826  ;;  %v2822_v59 = vpop.permute.xlu1 %2821  ;;  %v2950_v3 = vpack.i.bf16 %v2814_v2, %v3588_v4  ;;  %v2945_v28 = vpack.i.bf16 %v2819_v5, %v1096_v49 }
 0x512   : > { %v2829_v8 = vunpack.i.h.bf16 %v2827_v0  ;;  %v2828_v12 = vunpack.i.l.bf16 %v2827_v0  ;;  %v2824_v10 = vunpack.i.h.bf16 %v2822_v59  ;;  %v2823_v17 = vunpack.i.l.bf16 %v2822_v59 }
 0x513   : > { %2951 = vrot.lane.b32.xlu0 %v2950_v3, %s3843_s30  ;;  %2931 = vrot.lane.b32.xlu1 %v2930_v7, %s3843_s30 }
 0x514   : > { %v3596_v20 = vsel %vm614_vm6, %v2828_v12, %v2829_v8  ;;  %v1116_v61 = vsel %vm741_vm13, %v2823_v17, %v2824_v10  ;;  %vm3856_vm6 = vcmask 809984   ;;  %v1328_v17 = vld [vmem:[%s3794_s6 + $0x18] sm:$0xff]  ;;  %vm2335_vm13 = vmpackc.low %vm3163_vm12, %vm2155_vm8  ;;  %vm3869_vm8 = vcmask 998400  }
 0x515   : > { %v2837_v14 = vpop.permute.xlu0 %2836  ;;  %v2832_v15 = vpop.permute.xlu1 %2831  ;;  %v2965_v27 = vpack.i.bf16 %v2829_v8, %v3596_v20  ;;  %v2955_v40 = vpack.i.bf16 %v2824_v10, %v1116_v61  ;;  %2157 = vmatprep.mubr.msk.f32.mxu0 %vm1335_vm7, %v1328_v17 }
 0x516   : > { %v2834_v18 = vunpack.i.h.bf16 %v2832_v15  ;;  %v2833_v19 = vunpack.i.l.bf16 %v2832_v15  ;;  %v2839_v21 = vunpack.i.h.bf16 %v2837_v14  ;;  %v2838_v22 = vunpack.i.l.bf16 %v2837_v14  ;;  %v1326_v15 = vld [vmem:[%s3794_s6 + $0x8] sm:$0xff] }
 0x517   : > { %2961 = vrot.lane.b32.xlu0 %v2930_v7, %s3845_s17  ;;  %2941 = vrot.lane.b32.xlu1 %v2940_v13, %s3845_s17 }
 0x518   : > { %v3601_v24 = vsel %vm621_vm9, %v2833_v19, %v2834_v18  ;;  %v3610_v35 = vsel %vm3850_vm0, %v2838_v22, %v2839_v21  ;;  %1403 = vmatprep.mubr.f32.mxu1 %v1326_v15  ;;  %vm3858_vm9 = vcmask 769024   ;;  %vm3862_vm0 = vcmask 490496  }
 0x519   : > { %v2847_v25 = vpop.permute.xlu0 %2846  ;;  %v2842_v26 = vpop.permute.xlu1 %2841  ;;  %v2351_v33 = vpack.c.bf16 %v3601_v24, %v3596_v20  ;;  %v2985_v46 = vpack.i.bf16 %v2839_v21, %v3610_v35  ;;  %v2970_v56 = vpack.i.bf16 %v2834_v18, %v3601_v24  ;;  %v1909_v18 = vld [vmem:[%s3797_s9] sm:$0xf]  ;;  %vm3860_vm15 = vmmov %vm3858_vm9 }
 0x51a   : > { %v2844_v34 = vunpack.i.h.bf16 %v2842_v26  ;;  %v2843_v11 = vunpack.i.l.bf16 %v2842_v26  ;;  %v2849_v47 = vunpack.i.h.bf16 %v2847_v25  ;;  %v2848_v48 = vunpack.i.l.bf16 %v2847_v25  ;;  %vm3861_vm10 = vmmov %vm3858_vm9 }
 0x51b   : > { %2966 = vrot.lane.b32.xlu0 %v2965_v27, %s3843_s30  ;;  %2946 = vrot.lane.b32.xlu1 %v2945_v28, %s3843_s30  ;;  %vm3872_vm12 = vmmov %vm3862_vm0 }
 0x51c   : > { %v3613_v38 = vsel %vm3851_vm1, %v2843_v11, %v2844_v34  ;;  %v1101_v36 = vsel %vm3852_vm2, %v2848_v48, %v2849_v47  ;;  %vm3863_vm1 = vmmov %vm3862_vm0  ;;  %vm3864_vm2 = vcmask 1006592  }
 0x51d   : > { %v2355_v43 = vpack.c.bf16 %v3613_v38, %v3610_v35  ;;  %v2857_v44 = vpop.permute.xlu0 %2856  ;;  %v2852_v45 = vpop.permute.xlu1 %2851  ;;  %v2990_v39 = vpack.i.bf16 %v2844_v34, %v3613_v38  ;;  %v3005_v23 = vpack.i.bf16 %v2849_v47, %v1101_v36 }
 0x51e   : > { %v2859_v58 = vunpack.i.h.bf16 %v2857_v44  ;;  %v2858_v60 = vunpack.i.l.bf16 %v2857_v44  ;;  %v2854_v0 = vunpack.i.h.bf16 %v2852_v45  ;;  %v2853_v59 = vunpack.i.l.bf16 %v2852_v45 }
 0x51f   : > { %2976 = vrot.lane.b32.xlu0 %v2945_v28, %s3845_s17  ;;  %2956 = vrot.lane.b32.xlu1 %v2955_v40, %s3845_s17 }
 0x520   : > { %v1121_v6 = vsel %vm749_vm11, %v2858_v60, %v2859_v58  ;;  %v1106_v8 = vsel %vm3855_vm5, %v2853_v59, %v2854_v0  ;;  %vm3859_vm11 = vmmov %vm3858_vm9 }
 0x521   : > { %v2867_v51 = vpop.permute.xlu0 %2866  ;;  %v2862_v52 = vpop.permute.xlu1 %2861  ;;  %v3010_v13 = vpack.i.bf16 %v2854_v0, %v1106_v8  ;;  %vm3867_vm5 = vmmov %vm3862_vm0 }
 0x522   : > { %v2869_v37 = vunpack.i.h.bf16 %v2867_v51  ;;  %v2868_v30 = vunpack.i.l.bf16 %v2867_v51  ;;  %v2864_v7 = vunpack.i.h.bf16 %v2862_v52  ;;  %v2863_v50 = vunpack.i.l.bf16 %v2862_v52 }
 0x523   : > { %2986 = vrot.lane.b32.xlu0 %v2985_v46, %s3843_s30  ;;  %2971 = vrot.lane.b32.xlu1 %v2970_v56, %s3843_s30 }
 0x524   : > { %v3627_v1 = vsel %vm3853_vm3, %v2868_v30, %v2869_v37  ;;  %v1126_v10 = vsel %vm3856_vm6, %v2863_v50, %v2864_v7  ;;  %vm3865_vm3 = vmmov %vm3858_vm9 }
 0x525   : > { %v2872_v9 = vpop.permute.xlu1 %2871  ;;  %v3025_v12 = vpack.i.bf16 %v2869_v37, %v3627_v1  ;;  %v3020_v14 = vpack.i.bf16 %v2864_v7, %v1126_v10  ;;  %v2877_v19 = vpop.permute.xlu0 %2876  ;;  %vm3868_vm6 = vmmov %vm3862_vm0 }
 0x526   : > { %v2874_v62 = vunpack.i.h.bf16 %v2872_v9  ;;  %v2873_v63 = vunpack.i.l.bf16 %v2872_v9  ;;  %v2878_v28 = vunpack.i.l.bf16 %v2877_v19 }
 0x527   : > { %2996 = vrot.lane.b32.xlu0 %v2965_v27, %s3845_s17  ;;  %2981 = vrot.lane.b32.xlu1 %v2950_v3, %s3845_s17  ;;  %v3015_v3 = vpack.i.bf16 %v2859_v58, %v1121_v6 }
 0x528   : > { %v3630_v2 = vsel %vm3854_vm4, %v2873_v63, %v2874_v62  ;;  %vm3866_vm4 = vmmov %vm3865_vm3 }
 0x529   : > { %v2363_v5 = vpack.c.bf16 %v3630_v2, %v3627_v1  ;;  %v3030_v49 = vpack.i.bf16 %v2874_v62, %v3630_v2  ;;  %v2882_v21 = vpop.permute.xlu0 %2881  ;;  %v3669_v22 = vpop.permute.xlu1 %2891 }
 0x52a   : > { %v2884_v9 = vunpack.i.h.bf16 %v2882_v21  ;;  %v2883_v36 = vunpack.i.l.bf16 %v2882_v21 }
 0x52b   : > { %3006 = vrot.lane.b32.xlu0 %v3005_v23, %s3843_s30  ;;  %2991 = vrot.lane.b32.xlu1 %v2990_v39, %s3843_s30 }
 0x52d   : > { %v2887_v25 = vpop.permute.xlu0 %2886  ;;  %v3671_v26 = vpop.permute.xlu1 %2901 }
 0x52e   : > { %v2889_v0 = vunpack.i.h.bf16 %v2887_v25  ;;  %v2888_v59 = vunpack.i.l.bf16 %v2887_v25  ;;  %v2894_v25 = vunpack.i.h.bf16 %v3669_v22 }
 0x52f   : > { %3016 = vrot.lane.b32.xlu0 %v3015_v3, %s3845_s17  ;;  %3001 = vrot.lane.b32.xlu1 %v2970_v56, %s3845_s17  ;;  %v2334_v56 = vpack.c.bf16 %v3566_v42, %v3525_v29  ;;  %v1287_v42 = vsel %vm3862_vm0, %v2883_v36, %v2884_v9 }
 0x531   : > { %v3673_v27 = vpop.permute.xlu0 %2896 }
 0x533   : > { %3026 = vrot.lane.b32.xlu0 %v3025_v12, %s3843_s30  ;;  %3011 = vrot.lane.b32.xlu1 %v3010_v13, %s3843_s30 }
 0x537   : > { %3036 = vrot.lane.b32.xlu0 %v3005_v23, %s3845_s17  ;;  %3021 = vrot.lane.b32.xlu1 %v3020_v14, %s3845_s17  ;;  %v1025_v14 = vsel %vm3864_vm2, %v2888_v59, %v2889_v0  ;;  %vm3877_vm2 = vmmov %vm3865_vm3 }
 0x53b   : > { %3046 = vrot.lane.b32.xlu0 %v3025_v12, %s3845_s17  ;;  %3031 = vrot.lane.b32.xlu1 %v3030_v49, %s3843_s30 }
 0x53f   : > { %1319 = vrot.lane.b32.xlu0 %v3529_v31, %s3857_s20  ;;  %3041 = vrot.lane.b32.xlu1 %v3010_v13, %s3845_s17  ;;  %v1329_v31 = vld [vmem:[%s3795_s7] sm:$0xff] }
 0x543   : > { %3051 = vrot.lane.b32.xlu1 %v3030_v49, %s3845_s17  ;;  %1332 = vperm.xlu0 %3055, %v1329_v31   ;;  %v2343_v31 = vpack.c.bf16 %v1025_v14, %v3573_v53 }
 0x547   : > { %1321 = vrot.lane.b32.xlu1 %v3533_v32, %s3857_s20  ;;  %v2879_v32 = vunpack.i.h.bf16 %v2877_v19 }
 0x549   : > { %v1191_v46 = vsel %vm3858_vm9, %v2878_v28, %v2879_v32  ;;  %v2893_v32 = vunpack.i.l.bf16 %v3669_v22  ;;  %vm3870_vm9 = vmmov %vm3865_vm3 }
 0x54b   : > { %1912 = vperm.xlu1 %2779, %v1909_v18   ;;  %v1031_v53 = vsel %vm3869_vm8, %v2893_v32, %v2894_v25  ;;  %vm3882_vm8 = vmmov %vm3877_vm2 }
 0x54c   : > { %v2347_v9 = vpack.c.bf16 %v3588_v4, %v1031_v53  ;;  %v2903_v53 = vunpack.i.l.bf16 %v3671_v26 }
 0x579   : > { %v2912_v61 = vpop.permute.xlu0 %2911  ;;  %v2907_v34 = vpop.permute.xlu1 %2906 }
 0x57a   : > { %v2909_v11 = vunpack.i.h.bf16 %v2907_v34  ;;  %v2908_v40 = vunpack.i.l.bf16 %v2907_v34  ;;  %v2914_v44 = vunpack.i.h.bf16 %v2912_v61  ;;  %v2913_v45 = vunpack.i.l.bf16 %v2912_v61 }
 0x57c   : > { %v1192_v47 = vsel %vm3859_vm11, %v2908_v40, %v2909_v11  ;;  %v1193_v58 = vsel %vm3860_vm15, %v2913_v45, %v2914_v44  ;;  %vm3871_vm11 = vmmov %vm3865_vm3 }
 0x57d   : > { %v2927_v48 = vpop.permute.xlu0 %2926  ;;  %v2917_v51 = vpop.permute.xlu1 %2916  ;;  %v2332_v52 = vpack.c.bf16 %v1192_v47, %v1191_v46  ;;  %vm3874_vm15 = vmmov %vm3865_vm3 }
 0x57e   : > { %v2919_v37 = vunpack.i.h.bf16 %v2917_v51  ;;  %v2918_v30 = vunpack.i.l.bf16 %v2917_v51  ;;  %v2929_v3 = vunpack.i.h.bf16 %v2927_v48  ;;  %v2928_v29 = vunpack.i.l.bf16 %v2927_v48 }
 0x57f   : > { %2333 = vmatprep.subr.bf16.mxu1 %v2332_v52 }
 0x580   : > { %2336 = vmatpush3.bf16.msk.msra.mxu1 %vm2335_vm13, %v2334_v56  ;;  %v1194_v60 = vsel %vm3861_vm10, %v2918_v30, %v2919_v37  ;;  %v1195_v17 = vsel %vm3865_vm3, %v2928_v29, %v2929_v3  ;;  %vm3873_vm13 = vmmov %vm3862_vm0 }
 0x581   : > { %v2937_v62 = vpop.permute.xlu0 %2936  ;;  %v2922_v63 = vpop.permute.xlu1 %2921  ;;  %v2337_v39 = vpack.c.bf16 %v1194_v60, %v1193_v58  ;;  %vm3875_vm10 = vmmov %vm3865_vm3 }
 0x582   : > { %v2924_v23 = vunpack.i.h.bf16 %v2922_v63  ;;  %v2923_v6 = vunpack.i.l.bf16 %v2922_v63  ;;  %v2939_v15 = vunpack.i.h.bf16 %v2937_v62  ;;  %v2938_v49 = vunpack.i.l.bf16 %v2937_v62  ;;  %vm3878_vm3 = vmmov %vm3877_vm2 }
 0x583   : > { %2338 = vmatprep.subr.bf16.mxu1 %v2337_v39 }
 0x584   : > { %2340 = vmatpush3.bf16.msra.mxu1 %v2339_v57  ;;  %v1288_v7 = vsel %vm3863_vm1, %v2923_v6, %v2924_v23  ;;  %v1289_v34 = vsel %vm3867_vm5, %v2938_v49, %v2939_v15  ;;  %vm3876_vm1 = vmmov %vm3862_vm0 }
 0x585   : > { %v2952_v50 = vpop.permute.xlu0 %2951  ;;  %v2932_v8 = vpop.permute.xlu1 %2931  ;;  %v2366_v12 = vpack.c.bf16 %v1288_v7, %v1287_v42  ;;  %vm3880_vm5 = vmmov %vm3862_vm0 }
 0x586   : > { %v2934_v13 = vunpack.i.h.bf16 %v2932_v8  ;;  %v2933_v10 = vunpack.i.l.bf16 %v2932_v8  ;;  %v2954_v28 = vunpack.i.h.bf16 %v2952_v50  ;;  %v2953_v61 = vunpack.i.l.bf16 %v2952_v50 }
 0x587   : > { %2367 = vmatpush1.bf16.msra.mxu0 %v2366_v12 }
 0x588   : > { %v1196_v18 = vsel %vm3866_vm4, %v2933_v10, %v2934_v13  ;;  %2368 = vmatprep.subr.bf16.mxu0 %v3138_v54  ;;  %v1198_v52 = vsel %vm3871_vm11, %v2953_v61, %v2954_v28  ;;  %vm3879_vm4 = vmmov %vm3862_vm0  ;;  %vm3884_vm11 = vcmask 867328  }
 0x589   : > { %v2962_v41 = vpop.permute.xlu0 %2961  ;;  %v2942_v55 = vpop.permute.xlu1 %2941  ;;  %v2341_v57 = vpack.c.bf16 %v1196_v18, %v1195_v17 }
 0x58a   : > { %v2944_v19 = vunpack.i.h.bf16 %v2942_v55  ;;  %v2943_v21 = vunpack.i.l.bf16 %v2942_v55  ;;  %v2964_v48 = vunpack.i.h.bf16 %v2962_v41  ;;  %v2963_v51 = vunpack.i.l.bf16 %v2962_v41 }
 0x58b   : > { %2342 = vmatprep.subr.bf16.mxu1 %v2341_v57 }
 0x58c   : > { %2344 = vmatpush3.bf16.msra.mxu1 %v2343_v31  ;;  %v1290_v11 = vsel %vm3868_vm6, %v2943_v21, %v2944_v19  ;;  %v1292_v39 = vsel %vm3873_vm13, %v2963_v51, %v2964_v48  ;;  %vm3881_vm6 = vcmask 875520   ;;  %vm3886_vm13 = vmmov %vm3862_vm0 }
 0x58d   : > { %v2967_v40 = vpop.permute.xlu0 %2966  ;;  %v2947_v44 = vpop.permute.xlu1 %2946  ;;  %v2369_v45 = vpack.c.bf16 %v1290_v11, %v1289_v34  ;;  %v2899_v34 = vunpack.i.h.bf16 %v3673_v27  ;;  %v2898_v11 = vunpack.i.l.bf16 %v3673_v27 }
 0x58e   : > { %v2949_v46 = vunpack.i.h.bf16 %v2947_v44  ;;  %v2948_v47 = vunpack.i.l.bf16 %v2947_v44  ;;  %v2969_v60 = vunpack.i.h.bf16 %v2967_v40  ;;  %v2968_v62 = vunpack.i.l.bf16 %v2967_v40 }
 0x58f   : > { %2370 = vmatpush1.bf16.msra.mxu0 %v2369_v45 }
 0x590   : > { %v1197_v22 = vsel %vm3870_vm9, %v2948_v47, %v2949_v46  ;;  %2371 = vmatprep.subr.bf16.mxu0 %v3138_v54  ;;  %v1199_v4 = vsel %vm3874_vm15, %v2968_v62, %v2969_v60  ;;  %v2904_v47 = vunpack.i.h.bf16 %v3671_v26  ;;  %vm3883_vm9 = vmmov %vm3877_vm2 }
 0x591   : > { %v2977_v56 = vpop.permute.xlu0 %2976  ;;  %v2957_v37 = vpop.permute.xlu1 %2956  ;;  %v2345_v30 = vpack.c.bf16 %v1198_v52, %v1197_v22  ;;  %vm3887_vm15 = vmmov %vm3877_vm2 }
 0x592   : > { %v2959_v36 = vunpack.i.h.bf16 %v2957_v37  ;;  %v2958_v58 = vunpack.i.l.bf16 %v2957_v37  ;;  %v2979_v29 = vunpack.i.h.bf16 %v2977_v56  ;;  %v2978_v42 = vunpack.i.l.bf16 %v2977_v56 }
 0x593   : > { %2346 = vmatprep.subr.bf16.mxu1 %v2345_v30  ;;  %v1067_v56 = vsel %vm3881_vm6, %v2898_v11, %v2899_v34  ;;  %v1786_v34 = vld [vmem:[#allocation4 + $0x28] sm:$0xff]  ;;  %v1788_v11 = vld [vmem:[#allocation4 + $0x38] sm:$0xff] }
 0x594   : > { %2348 = vmatpush3.bf16.msra.mxu1 %v2347_v9  ;;  %v1291_v63 = vsel %vm3872_vm12, %v2958_v58, %v2959_v36  ;;  %v1293_v49 = vsel %vm3862_vm0, %v2978_v42, %v2979_v29  ;;  %vm3885_vm12 = vmmov %vm3862_vm0 }
 0x595   : > { %v2987_v23 = vpop.permute.xlu0 %2986  ;;  %v2972_v6 = vpop.permute.xlu1 %2971  ;;  %v2372_v0 = vpack.c.bf16 %v1292_v39, %v1291_v63 }
 0x596   : > { %v2974_v59 = vunpack.i.h.bf16 %v2972_v6  ;;  %v2973_v3 = vunpack.i.l.bf16 %v2972_v6  ;;  %v2989_v14 = vunpack.i.h.bf16 %v2987_v23  ;;  %v2988_v15 = vunpack.i.l.bf16 %v2987_v23 }
 0x597   : > { %2373 = vmatpush1.bf16.msra.mxu0 %v2372_v0 }
 0x598   : > { %v1200_v7 = vsel %vm3875_vm10, %v2973_v3, %v2974_v59  ;;  %2374 = vmatprep.subr.bf16.mxu0 %v3138_v54  ;;  %v1201_v25 = vsel %vm3877_vm2, %v2988_v15, %v2989_v14  ;;  %vm3888_vm10 = vmmov %vm3877_vm2 }
 0x599   : > { %v2997_v50 = vpop.permute.xlu0 %2996  ;;  %v2982_v8 = vpop.permute.xlu1 %2981  ;;  %v2349_v12 = vpack.c.bf16 %v1200_v7, %v1199_v4  ;;  %vm3890_vm2 = vmmov %vm3862_vm0 }
 0x59a   : > { %v2984_v13 = vunpack.i.h.bf16 %v2982_v8  ;;  %v2983_v10 = vunpack.i.l.bf16 %v2982_v8  ;;  %v2999_v19 = vunpack.i.h.bf16 %v2997_v50  ;;  %v2998_v21 = vunpack.i.l.bf16 %v2997_v50 }
 0x59b   : > { %2350 = vmatprep.subr.bf16.mxu1 %v2349_v12 }
 0x59c   : > { %2352 = vmatpush3.bf16.msra.mxu1 %v2351_v33  ;;  %v1294_v17 = vsel %vm3876_vm1, %v2983_v10, %v2984_v13  ;;  %v1295_v45 = vsel %vm3879_vm4, %v2998_v21, %v2999_v19  ;;  %vm3889_vm1 = vmmov %vm3862_vm0  ;;  %vm3164_vm4 = vmmov 0  }
 0x59d   : > { %v3007_v18 = vpop.permute.xlu0 %3006  ;;  %v2992_v41 = vpop.permute.xlu1 %2991  ;;  %v2375_v55 = vpack.c.bf16 %v1294_v17, %v1293_v49 }
 0x59e   : > { %v2994_v57 = vunpack.i.h.bf16 %v2992_v41  ;;  %v2993_v31 = vunpack.i.l.bf16 %v2992_v41  ;;  %v3009_v40 = vunpack.i.h.bf16 %v3007_v18  ;;  %v3008_v44 = vunpack.i.l.bf16 %v3007_v18  ;;  %v1325_v41 = vld [vmem:[%s3794_s6] sm:$0xff] }
 0x59f   : > { %2376 = vmatpush1.bf16.msra.mxu0 %v2375_v55 }
 0x5a0   : > { %v1202_v32 = vsel %vm3878_vm3, %v2993_v31, %v2994_v57  ;;  %2377 = vmatprep.subr.bf16.mxu0 %v3138_v54  ;;  %v1203_v35 = vsel %vm3882_vm8, %v3008_v44, %v3009_v40  ;;  %vm3891_vm3 = vmmov %vm3862_vm0  ;;  %v2393_v44 = vpack.c.bf16 %v1788_v11, %v1786_v34  ;;  %v1825_v11 = vld [vmem:[#allocation4 + $0x160] sm:$0xff] }
 0x5a1   : > { %v3017_v20 = vpop.permute.xlu0 %3016  ;;  %v3002_v24 = vpop.permute.xlu1 %3001  ;;  %v2353_v33 = vpack.c.bf16 %v1202_v32, %v1201_v25  ;;  %v1327_v32 = vld [vmem:[%s3794_s6 + $0x10] sm:$0xff] }
 0x5a2   : > { %v3004_v28 = vunpack.i.h.bf16 %v3002_v24  ;;  %v3003_v61 = vunpack.i.l.bf16 %v3002_v24  ;;  %v3019_v37 = vunpack.i.h.bf16 %v3017_v20  ;;  %v3018_v30 = vunpack.i.l.bf16 %v3017_v20  ;;  %v1784_v24 = vld [vmem:[#allocation4 + $0x18] sm:$0xff] }
 0x5a3   : > { %2354 = vmatprep.subr.bf16.mxu1 %v2353_v33  ;;  %v1781_v33 = vld [vmem:[#allocation4] sm:$0xff] }
 0x5a4   : > { %2356 = vmatpush3.bf16.msra.mxu1 %v2355_v43  ;;  %v1296_v46 = vsel %vm3880_vm5, %v3003_v61, %v3004_v28  ;;  %v1073_v43 = vsel %vm3884_vm11, %v2903_v53, %v2904_v47  ;;  %v1297_v23 = vsel %vm3885_vm12, %v3018_v30, %v3019_v37  ;;  %v1783_v61 = vld [vmem:[#allocation4 + $0x10] sm:$0xff]  ;;  %v1790_v47 = vld [vmem:[#allocation4 + $0x48] sm:$0xff]  ;;  %v1792_v53 = vld [vmem:[#allocation4 + $0x58] sm:$0xff] }
 0x5a5   : > { %v3027_v48 = vpop.permute.xlu0 %3026  ;;  %v3012_v51 = vpop.permute.xlu1 %3011  ;;  %v2378_v22 = vpack.c.bf16 %v1296_v46, %v1295_v45  ;;  %v2359_v36 = vpack.c.bf16 %v1073_v43, %v1067_v56  ;;  %v2391_v40 = vpack.c.bf16 %v1783_v61, %v1781_v33  ;;  %v1785_v45 = vld [vmem:[#allocation4 + $0x20] sm:$0xff]  ;;  %v1787_v46 = vld [vmem:[#allocation4 + $0x30] sm:$0xff]  ;;  %v1796_v56 = vld [vmem:[#allocation4 + $0x78] sm:$0xff] }
 0x5a6   : > { %v3014_v52 = vunpack.i.h.bf16 %v3012_v51  ;;  %v3013_v27 = vunpack.i.l.bf16 %v3012_v51  ;;  %v3029_v63 = vunpack.i.h.bf16 %v3027_v48  ;;  %v3028_v39 = vunpack.i.l.bf16 %v3027_v48  ;;  %v1798_v43 = vld [vmem:[#allocation4 + $0x88] sm:$0xff] }
 0x5a7   : > { %2379 = vmatpush1.bf16.msra.mxu0 %v2378_v22  ;;  %v2395_v48 = vpack.c.bf16 %v1787_v46, %v1785_v45  ;;  %v2397_v51 = vpack.c.bf16 %v1792_v53, %v1790_v47  ;;  %v1789_v22 = vld [vmem:[#allocation4 + $0x40] sm:$0xff]  ;;  %v1826_v33 = vld [vmem:[#allocation4 + $0x168] sm:$0xff]  ;;  %v1832_v45 = vld [vmem:[#allocation4 + $0x198] sm:$0xff] }
 0x5a8   : > { %v1204_v38 = vsel %vm3883_vm9, %v3013_v27, %v3014_v52  ;;  %2380 = vmatprep.subr.bf16.mxu0 %v3138_v54  ;;  %v1205_v7 = vsel %vm3887_vm15, %v3028_v39, %v3029_v63  ;;  %v1791_v52 = vld [vmem:[#allocation4 + $0x50] sm:$0xff]  ;;  %v1794_v27 = vld [vmem:[#allocation4 + $0x68] sm:$0xff]  ;;  %v1804_v63 = vld [vmem:[#allocation4 + $0xb8] sm:$0xff] }
 0x5a9   : > { %v3022_v9 = vpop.permute.xlu1 %3021  ;;  %v2357_v26 = vpack.c.bf16 %v1204_v38, %v1203_v35  ;;  %v3037_v62 = vpop.permute.xlu0 %3036  ;;  %v2399_v37 = vpack.c.bf16 %v1791_v52, %v1789_v22  ;;  %v2401_v30 = vpack.c.bf16 %v1796_v56, %v1794_v27  ;;  %v1793_v35 = vld [vmem:[#allocation4 + $0x60] sm:$0xff]  ;;  %v1795_v38 = vld [vmem:[#allocation4 + $0x70] sm:$0xff]  ;;  %v1836_v22 = vld [vmem:[#allocation4 + $0x1b8] sm:$0xff] }
 0x5aa   : > { %v3024_v58 = vunpack.i.h.bf16 %v3022_v9  ;;  %v3023_v60 = vunpack.i.l.bf16 %v3022_v9  ;;  %v3039_v42 = vunpack.i.h.bf16 %v3037_v62  ;;  %v3038_v4 = vunpack.i.l.bf16 %v3037_v62  ;;  %v1800_v9 = vld [vmem:[#allocation4 + $0x98] sm:$0xff]  ;;  %v1802_v62 = vld [vmem:[#allocation4 + $0xa8] sm:$0xff]  ;;  %v1829_v53 = vld [vmem:[#allocation4 + $0x180] sm:$0xff] }
 0x5ab   : > { %2358 = vmatprep.subr.bf16.mxu1 %v2357_v26  ;;  %v2403_v26 = vpack.c.bf16 %v1795_v38, %v1793_v35  ;;  %v1833_v56 = vld [vmem:[#allocation4 + $0x1a0] sm:$0xff]  ;;  %v1840_v35 = vld [vmem:[#allocation4 + $0x1d8] sm:$0xff] }
 0x5ac   : > { %2360 = vmatpush3.bf16.msra.mxu1 %v2359_v36  ;;  %v1298_v6 = vsel %vm3886_vm13, %v3023_v60, %v3024_v58  ;;  %v1299_v17 = vsel %vm3862_vm0, %v3038_v4, %v3039_v42  ;;  %v2405_v36 = vpack.c.bf16 %v1800_v9, %v1798_v43  ;;  %v1797_v58 = vld [vmem:[#allocation4 + $0x80] sm:$0xff]  ;;  %v1799_v60 = vld [vmem:[#allocation4 + $0x90] sm:$0xff] }
 0x5ad   : > { %v3032_v0 = vpop.permute.xlu1 %3031  ;;  %v2381_v59 = vpack.c.bf16 %v1298_v6, %v1297_v23  ;;  %v3047_v8 = vpop.permute.xlu0 %3046  ;;  %v2407_v39 = vpack.c.bf16 %v1799_v60, %v1797_v58  ;;  %v2409_v23 = vpack.c.bf16 %v1804_v63, %v1802_v62  ;;  %v1801_v6 = vld [vmem:[#allocation4 + $0xa0] sm:$0xff]  ;;  %v1844_v58 = vld [vmem:[#allocation4 + $0x1f8] sm:$0xff] }
 0x5ae   : > { %v3034_v3 = vunpack.i.h.bf16 %v3032_v0  ;;  %v3033_v29 = vunpack.i.l.bf16 %v3032_v0  ;;  %v3049_v15 = vunpack.i.h.bf16 %v3047_v8  ;;  %v3048_v49 = vunpack.i.l.bf16 %v3047_v8  ;;  %v1803_v0 = vld [vmem:[#allocation4 + $0xb0] sm:$0xff]  ;;  %v1805_v4 = vld [vmem:[#allocation4 + $0xc0] sm:$0xff]  ;;  %v1812_v8 = vld [vmem:[#allocation4 + $0xf8] sm:$0xff] }
 0x5af   : > { %2382 = vmatpush1.bf16.msra.mxu0 %v2381_v59  ;;  %v1806_v59 = vld [vmem:[#allocation4 + $0xc8] sm:$0xff]  ;;  %v1837_v9 = vld [vmem:[#allocation4 + $0x1c0] sm:$0xff] }
 0x5b0   : > { %v1206_v50 = vsel %vm3888_vm10, %v3033_v29, %v3034_v3  ;;  %2383 = vmatprep.subr.bf16.mxu0 %v3138_v54  ;;  %v1301_v1 = vsel %vm3890_vm2, %v3048_v49, %v3049_v15  ;;  %v1808_v3 = vld [vmem:[#allocation4 + $0xd8] sm:$0xff]  ;;  %v2411_v29 = vpack.c.bf16 %v1803_v0, %v1801_v6  ;;  %v1814_v15 = vld [vmem:[#allocation4 + $0x108] sm:$0xff] }
 0x5b1   : > { %v3042_v12 = vpop.permute.xlu1 %3041  ;;  %v2361_v13 = vpack.c.bf16 %v1206_v50, %v1205_v7  ;;  %v1320_v25 = vpop.permute.xlu0 %1319  ;;  %v2413_v42 = vpack.c.bf16 %v1808_v3, %v1806_v59  ;;  %v1807_v7 = vld [vmem:[#allocation4 + $0xd0] sm:$0xff]  ;;  %v1810_v50 = vld [vmem:[#allocation4 + $0xe8] sm:$0xff]  ;;  %v1816_v49 = vld [vmem:[#allocation4 + $0x118] sm:$0xff] }
 0x5b2   : > { %v3044_v10 = vunpack.i.h.bf16 %v3042_v12  ;;  %v3043_v14 = vunpack.i.l.bf16 %v3042_v12  ;;  %v2415_v12 = vpack.c.bf16 %v1807_v7, %v1805_v4  ;;  %v1482_v4 = vld [vmem:[%s3796_s8] sm:$0xf] }
 0x5b3   : > { %2362 = vmatprep.subr.bf16.mxu1 %v2361_v13  ;;  %v2417_v13 = vpack.c.bf16 %v1812_v8, %v1810_v50  ;;  %v2159_v50 = vld [vmem:[%s3796_s8 + $0x4] sm:$0xf]  ;;  %v2161_v8 = vld [vmem:[%s3796_s8 + $0x8] sm:$0xf] }
 0x5b4   : > { %2364 = vmatpush3.bf16.msra.mxu1 %v2363_v5  ;;  %v1300_v18 = vsel %vm3889_vm1, %v3043_v14, %v3044_v10  ;;  %v1809_v10 = vld [vmem:[#allocation4 + $0xe0] sm:$0xff]  ;;  %v1811_v14 = vld [vmem:[#allocation4 + $0xf0] sm:$0xff] }
 0x5b5   : > { %v3052_v55 = vpop.permute.xlu1 %3051  ;;  %v2384_v57 = vpack.c.bf16 %v1300_v18, %v1299_v17  ;;  %2212 = vmatprep.subr.mxu1 %v3161_v16  ;;  %v2419_v17 = vpack.c.bf16 %v1811_v14, %v1809_v10  ;;  %v2421_v18 = vpack.c.bf16 %v1816_v49, %v1814_v15  ;;  %v1843_v10 = vld [vmem:[#allocation4 + $0x1f0] sm:$0xff]  ;;  %v1846_v15 = vld [vmem:[#allocation4 + $0x208] sm:$0xff]  ;;  %v1848_v49 = vld [vmem:[#allocation4 + $0x218] sm:$0xff] }
 0x5b6   : > { %v3054_v31 = vunpack.i.h.bf16 %v3052_v55  ;;  %v3053_v19 = vunpack.i.l.bf16 %v3052_v55  ;;  %v1815_v55 = vld [vmem:[#allocation4 + $0x110] sm:$0xff] }
 0x5b7   : > { %2385 = vmatpush1.bf16.msra.mxu0 %v2384_v57  ;;  %1404 = vmatmul.mubr.f32.vlgmr.msra.gmra.mrb[4].mxu1 %v1325_v41  ;;  %v1813_v41 = vld [vmem:[#allocation4 + $0x100] sm:$0xff]  ;;  %v1818_v57 = vld [vmem:[#allocation4 + $0x128] sm:$0xff] }
 0x5b8   : > { %2386 = vmatprep.subr.bf16.mxu0 %v3138_v54  ;;  %v1302_v2 = vsel %vm3891_vm3, %v3053_v19, %v3054_v31  ;;  %2214 = vmatprep.mubr.msk.f32.mxu1 %vm3164_vm4, %v3161_v16  ;;  %v1782_v54 = vld [vmem:[#allocation4 + $0x8] sm:$0xff]  ;;  %v1820_v31 = vld [vmem:[#allocation4 + $0x138] sm:$0xff]  ;;  %v2423_v19 = vpack.c.bf16 %v1815_v55, %v1813_v41  ;;  %v1845_v41 = vld [vmem:[#allocation4 + $0x200] sm:$0xff] }
 0x5b9   : > { %v2387_v5 = vpack.c.bf16 %v1302_v2, %v1301_v1  ;;  %v1322_v21 = vpop.permute.xlu1 %1321  ;;  %v2389_v28 = vpack.c.bf16 %v1784_v24, %v1782_v54  ;;  %v2425_v1 = vpack.c.bf16 %v1820_v31, %v1818_v57  ;;  %v1817_v2 = vld [vmem:[#allocation4 + $0x120] sm:$0xff]  ;;  %v1823_v24 = vld [vmem:[#allocation4 + $0x150] sm:$0xff]  ;;  %v1850_v31 = vld [vmem:[#allocation4 + $0x228] sm:$0xff] }
 0x5ba   : > { %v1323_v20 = vsel %vm891_vm14, %v1320_v25, %v1322_v21  ;;  %v1822_v21 = vld [vmem:[#allocation4 + $0x148] sm:$0xff]  ;;  %v1824_v25 = vld [vmem:[#allocation4 + $0x158] sm:$0xff]  ;;  %v1821_v54 = vld [vmem:[#allocation4 + $0x140] sm:$0xff] }
 0x5bb   : > { %2388 = vmatpush1.bf16.msra.mxu0 %v2387_v5  ;;  %v1819_v5 = vld [vmem:[#allocation4 + $0x130] sm:$0xff]  ;;  %v2431_v61 = vpack.c.bf16 %v1823_v24, %v1821_v54 }
 0x5bc   : > { %1441 = vmatprep.subr.mxu0 %v3161_v16  ;;  %v1847_v55 = vld [vmem:[#allocation4 + $0x210] sm:$0xff] }
 0x5bf   : > { %1442 = vmatpush1.msra.mxu0 %v1323_v20  ;;  %v2429_v20 = vpack.c.bf16 %v1824_v25, %v1822_v21  ;;  %v1851_v21 = vld [vmem:[#allocation4 + $0x230] sm:$0xff] }
 0x5c0   : > { %1474 = vmatmul.mubr.f32.vlgmr.msra.gmra.mrb[0].mxu0 %v1327_v32  ;;  %2390 = vmatprep.subr.bf16.mxu0 %v2389_v28  ;;  %v2427_v32 = vpack.c.bf16 %v1819_v5, %v1817_v2  ;;  %v1828_v28 = vld [vmem:[#allocation4 + $0x178] sm:$0xff]  ;;  %v1849_v5 = vld [vmem:[#allocation4 + $0x220] sm:$0xff] }
 0x5c1   : > { %2392 = vmatpush1.bf16.msra.mxu0 %v2391_v40  ;;  %v2433_v34 = vpack.c.bf16 %v1828_v28, %v1826_v33  ;;  %v1827_v40 = vld [vmem:[#allocation4 + $0x170] sm:$0xff]  ;;  %v2459_v54 = vpack.c.bf16 %v1851_v21, %v1849_v5  ;;  %v1853_v33 = vld [vmem:[#allocation4 + $0x240] sm:$0xff] }
 0x5c2   : > { %2394 = vmatprep.subr.bf16.mxu0 %v2393_v44  ;;  %v1830_v44 = vld [vmem:[#allocation4 + $0x188] sm:$0xff]  ;;  %v2435_v46 = vpack.c.bf16 %v1827_v40, %v1825_v11  ;;  %v1333_v6 = vpop.permute.xlu0 %1332  ;;  %v1855_v28 = vld [vmem:[#allocation4 + $0x250] sm:$0xff]  ;;  %v1860_v11 = vld [vmem:[#allocation4 + $0x278] sm:$0xff] }
 0x5c3   : > { %v2437_v47 = vpack.c.bf16 %v1832_v45, %v1830_v44  ;;  %v2463_v44 = vpack.c.bf16 %v1855_v28, %v1853_v33  ;;  %v1889_v21 = vld [vmem:[#allocation4 + $0x360] sm:$0xff]  ;;  %v1895_v28 = vld [vmem:[#allocation4 + $0x390] sm:$0xff] }
 0x5c4   : > { %v1893_v33 = vld [vmem:[#allocation4 + $0x380] sm:$0xff] }
 0x5c5   : > { %2396 = vmatpush1.bf16.msra.mxu0 %v2395_v48  ;;  %v1831_v48 = vld [vmem:[#allocation4 + $0x190] sm:$0xff] }
 0x5c6   : > { %2398 = vmatprep.subr.bf16.mxu0 %v2397_v51  ;;  %v1834_v51 = vld [vmem:[#allocation4 + $0x1a8] sm:$0xff]  ;;  %v2439_v52 = vpack.c.bf16 %v1831_v48, %v1829_v53 }
 0x5c7   : > { %v2441_v27 = vpack.c.bf16 %v1836_v22, %v1834_v51  ;;  %v1862_v48 = vld [vmem:[#allocation4 + $0x288] sm:$0xff]  ;;  %v1864_v51 = vld [vmem:[#allocation4 + $0x298] sm:$0xff] }
 0x5c9   : > { %2400 = vmatpush1.bf16.msra.mxu0 %v2399_v37  ;;  %v1835_v37 = vld [vmem:[#allocation4 + $0x1b0] sm:$0xff] }
 0x5ca   : > { %2402 = vmatprep.subr.bf16.mxu0 %v2401_v30  ;;  %v1838_v30 = vld [vmem:[#allocation4 + $0x1c8] sm:$0xff]  ;;  %v2443_v38 = vpack.c.bf16 %v1835_v37, %v1833_v56  ;;  %v1861_v56 = vld [vmem:[#allocation4 + $0x280] sm:$0xff]  ;;  %v1863_v37 = vld [vmem:[#allocation4 + $0x290] sm:$0xff] }
 0x5cb   : > { %v2445_v43 = vpack.c.bf16 %v1840_v35, %v1838_v30  ;;  %v1866_v30 = vld [vmem:[#allocation4 + $0x2a8] sm:$0xff]  ;;  %v1868_v35 = vld [vmem:[#allocation4 + $0x2b8] sm:$0xff] }
 0x5cd   : > { %2404 = vmatpush1.bf16.msra.mxu0 %v2403_v26  ;;  %v1839_v26 = vld [vmem:[#allocation4 + $0x1d0] sm:$0xff] }
 0x5ce   : > { %2406 = vmatprep.subr.bf16.mxu0 %v2405_v36  ;;  %v1842_v36 = vld [vmem:[#allocation4 + $0x1e8] sm:$0xff]  ;;  %v2447_v60 = vpack.c.bf16 %v1839_v26, %v1837_v9  ;;  %v1865_v9 = vld [vmem:[#allocation4 + $0x2a0] sm:$0xff]  ;;  %v1867_v26 = vld [vmem:[#allocation4 + $0x2b0] sm:$0xff] }
 0x5cf   : > { %v2449_v62 = vpack.c.bf16 %v1844_v58, %v1842_v36  ;;  %v1870_v36 = vld [vmem:[#allocation4 + $0x2c8] sm:$0xff]  ;;  %v1872_v58 = vld [vmem:[#allocation4 + $0x2d8] sm:$0xff] }
 0x5d1   : > { %2408 = vmatpush1.bf16.msra.mxu0 %v2407_v39 }
 0x5d2   : > { %2410 = vmatprep.subr.bf16.mxu0 %v2409_v23 }
 0x5d5   : > { %2412 = vmatpush1.bf16.msra.mxu0 %v2411_v29 }
 0x5d6   : > { %2414 = vmatprep.subr.bf16.mxu0 %v2413_v42 }
 0x5d9   : > { %2416 = vmatpush1.bf16.msra.mxu0 %v2415_v12  ;;  %v2163_v12 = vld [vmem:[%s3796_s8 + $0xc] sm:$0xf] }
 0x5da   : > { %2418 = vmatprep.subr.bf16.mxu0 %v2417_v13  ;;  %v1841_v13 = vld [vmem:[#allocation4 + $0x1e0] sm:$0xff] }
 0x5db   : > { %v2451_v14 = vpack.c.bf16 %v1843_v10, %v1841_v13  ;;  %v1882_v13 = vld [vmem:[#allocation4 + $0x328] sm:$0xff]  ;;  %v1884_v10 = vld [vmem:[#allocation4 + $0x338] sm:$0xff] }
 0x5dd   : > { %2420 = vmatpush1.bf16.msra.mxu0 %v2419_v17  ;;  %v2453_v17 = vpack.c.bf16 %v1848_v49, %v1846_v15  ;;  %v2489_v15 = vpack.c.bf16 %v1884_v10, %v1882_v13  ;;  %v1881_v49 = vld [vmem:[#allocation4 + $0x320] sm:$0xff] }
 0x5de   : > { %2422 = vmatprep.subr.bf16.mxu0 %v2421_v18 }
 0x5e1   : > { %2424 = vmatpush1.bf16.msra.mxu0 %v2423_v19  ;;  %v2455_v19 = vpack.c.bf16 %v1847_v55, %v1845_v41  ;;  %v1888_v41 = vld [vmem:[#allocation4 + $0x358] sm:$0xff] }
 0x5e2   : > { %2426 = vmatprep.subr.bf16.mxu0 %v2425_v1 }
 0x5e5   : > { %2428 = vmatpush1.bf16.msra.mxu0 %v2427_v32  ;;  %v1854_v32 = vld [vmem:[#allocation4 + $0x248] sm:$0xff] }
 0x5e6   : > { %2430 = vmatprep.subr.bf16.mxu0 %v2429_v20  ;;  %v1856_v20 = vld [vmem:[#allocation4 + $0x258] sm:$0xff] }
 0x5e7   : > { %v2461_v24 = vpack.c.bf16 %v1856_v20, %v1854_v32  ;;  %v1894_v32 = vld [vmem:[#allocation4 + $0x388] sm:$0xff]  ;;  %v1896_v20 = vld [vmem:[#allocation4 + $0x398] sm:$0xff] }
 0x5e9   : > { %2432 = vmatpush1.bf16.msra.mxu0 %v2431_v61 }
 0x5ea   : > { %2434 = vmatprep.subr.bf16.mxu0 %v2433_v34  ;;  %v1858_v34 = vld [vmem:[#allocation4 + $0x268] sm:$0xff] }
 0x5eb   : > { %v2465_v45 = vpack.c.bf16 %v1860_v11, %v1858_v34  ;;  %v1898_v34 = vld [vmem:[#allocation4 + $0x3a8] sm:$0xff]  ;;  %v1900_v11 = vld [vmem:[#allocation4 + $0x3b8] sm:$0xff] }
 0x5ed   : > { %2436 = vmatpush1.bf16.msra.mxu0 %v2435_v46  ;;  %v1857_v46 = vld [vmem:[#allocation4 + $0x260] sm:$0xff] }
 0x5ee   : > { %2438 = vmatprep.subr.bf16.mxu0 %v2437_v47  ;;  %v1859_v47 = vld [vmem:[#allocation4 + $0x270] sm:$0xff] }
 0x5f1   : > { %2440 = vmatpush1.bf16.msra.mxu0 %v2439_v52  ;;  %v2467_v52 = vpack.c.bf16 %v1859_v47, %v1857_v46  ;;  %v1899_v46 = vld [vmem:[#allocation4 + $0x3b0] sm:$0xff]  ;;  %v1902_v47 = vld [vmem:[#allocation4 + $0x3c8] sm:$0xff] }
 0x5f2   : > { %2442 = vmatprep.subr.bf16.mxu0 %v2441_v27  ;;  %v2469_v27 = vpack.c.bf16 %v1864_v51, %v1862_v48 }
 0x5f5   : > { %2444 = vmatpush1.bf16.msra.mxu0 %v2443_v38  ;;  %v2471_v38 = vpack.c.bf16 %v1863_v37, %v1861_v56  ;;  %v1908_v56 = vld [vmem:[#allocation4 + $0x3f8] sm:$0xff] }
 0x5f6   : > { %2446 = vmatprep.subr.bf16.mxu0 %v2445_v43  ;;  %v2473_v43 = vpack.c.bf16 %v1868_v35, %v1866_v30  ;;  %v1905_v35 = vld [vmem:[#allocation4 + $0x3e0] sm:$0xff] }
 0x5f9   : > { %2448 = vmatpush1.bf16.msra.mxu0 %v2447_v60  ;;  %v2475_v60 = vpack.c.bf16 %v1867_v26, %v1865_v9  ;;  %v1913_v9 = vpop.permute.xlu1 %1912 }
 0x5fa   : > { %2450 = vmatprep.subr.bf16.mxu0 %v2449_v62  ;;  %v2477_v62 = vpack.c.bf16 %v1872_v58, %v1870_v36 }
 0x5fd   : > { %2452 = vmatpush1.bf16.msra.mxu0 %v2451_v14 }
 0x5fe   : > { %2454 = vmatprep.subr.bf16.mxu0 %v2453_v17  ;;  %v1883_v17 = vld [vmem:[#allocation4 + $0x330] sm:$0xff] }
 0x5ff   : > { %v2491_v55 = vpack.c.bf16 %v1883_v17, %v1881_v49 }
 0x68a   : > { %v2201_v63 = vpop.f32.mrb[4].mxu1 }
 0x68b   : > { %v2202_v39 = vpop.f32.mrb[5].mxu1 }
 0x68c   : > { %v2203_v23 = vadd.f32 %v2202_v39, %v2201_v63  ;;  %v1869_v63 = vld [vmem:[#allocation4 + $0x2c0] sm:$0xff]  ;;  %v1871_v39 = vld [vmem:[#allocation4 + $0x2d0] sm:$0xff] }
 0x68e   : > { %v1406_v0 = vadd.f32 %v2203_v23, %v1333_v6  ;;  %v1874_v23 = vld [vmem:[#allocation4 + $0x2e8] sm:$0xff]  ;;  %v1876_v6 = vld [vmem:[#allocation4 + $0x2f8] sm:$0xff] }
 0x693   : > { %v1475_v59 = vpop.f32.mrb[0].mxu0 }
 0x694   : > { %v1476_v3 = vadd.f32 %v1475_v59, %v1406_v0  ;;  %v1477_v29 = vpop.f32.mrb[1].mxu0  ;;  %v2479_v0 = vpack.c.bf16 %v1871_v39, %v1869_v63  ;;  %v2481_v59 = vpack.c.bf16 %v1876_v6, %v1874_v23 }
 0x695   : > { %v1875_v29 = vld [vmem:[#allocation4 + $0x2f0] sm:$0xff] }
 0x696   : > { %vm1479_vm14 = vcmp.ge.f32.partialorder %v1476_v3, 0.0  ;;  %v1480_v42 = vmul.f32 0.01, %v1476_v3 }
 0x698   : > { %v1481_v7 = vsel %vm1479_vm14, %v1476_v3, %v1480_v42  ;;  %v1873_v3 = vld [vmem:[#allocation4 + $0x2e0] sm:$0xff]  ;;  %v1878_v42 = vld [vmem:[#allocation4 + $0x308] sm:$0xff] }
 0x699   : > { %2213 = vmatpush3.msra.mxu1 %v1481_v7 }
 0x69a   : > { %2215 = vmatmul.mubr.msk.f32.vlgmr.msra.gmra.mrb[6].mxu1 %vm1335_vm7, %v1482_v4  ;;  %2217 = vmatprep.subr.mxu1 %v3161_v16  ;;  %v1880_v4 = vld [vmem:[#allocation4 + $0x318] sm:$0xff] }
 0x69b   : > { %2218 = vmatpush3.msra.mxu1 %v1481_v7  ;;  %2219 = vmatprep.mubr.msk.f32.mxu1 %vm3164_vm4, %v3161_v16 }
 0x69c   : > { %2222 = vmatprep.subr.mxu1 %v3161_v16 }
 0x69e   : > { %2220 = vmatmul.mubr.msk.f32.vlgmr.msra.gmra.mrb[8].mxu1 %vm1335_vm7, %v2159_v50  ;;  %v2485_v50 = vpack.c.bf16 %v1880_v4, %v1878_v42 }
 0x69f   : > { %2223 = vmatpush3.msra.mxu1 %v1481_v7  ;;  %2224 = vmatprep.mubr.msk.f32.mxu1 %vm3164_vm4, %v3161_v16 }
 0x6a0   : > { %2227 = vmatprep.subr.mxu1 %v3161_v16 }
 0x6a2   : > { %2225 = vmatmul.mubr.msk.f32.vlgmr.msra.gmra.mrb[10].mxu1 %vm1335_vm7, %v2161_v8  ;;  %v1877_v8 = vld [vmem:[#allocation4 + $0x300] sm:$0xff] }
 0x6a3   : > { %2228 = vmatpush3.msra.mxu1 %v1481_v7  ;;  %2229 = vmatprep.mubr.msk.f32.mxu1 %vm3164_vm4, %v3161_v16  ;;  %v1852_v16 = vld [vmem:[#allocation4 + $0x238] sm:$0xff]  ;;  %v2483_v7 = vpack.c.bf16 %v1875_v29, %v1873_v3 }
 0x6a4   : > { %v2457_v2 = vpack.c.bf16 %v1852_v16, %v1850_v31  ;;  %v1885_v31 = vld [vmem:[#allocation4 + $0x340] sm:$0xff]  ;;  %v1887_v16 = vld [vmem:[#allocation4 + $0x350] sm:$0xff] }
 0x6a6   : > { %2230 = vmatmul.mubr.msk.f32.vlgmr.msra.gmra.mrb[12].mxu1 %vm1335_vm7, %v2163_v12  ;;  %v1879_v12 = vld [vmem:[#allocation4 + $0x310] sm:$0xff] }
 0x6a7   : > { %v2487_v14 = vpack.c.bf16 %v1879_v12, %v1877_v8 }
 0x76d   : > { %v1552_v18 = vpop.f32.mrb[6].mxu1 }
 0x76e   : > { %v2216_v57 = vpop.f32.mrb[7].mxu1 }
 0x771   : > { %v1627_v1 = vpop.f32.mrb[8].mxu1 }
 0x772   : > { %1979 = vmatprep.mubr.f32.mxu0 %v1627_v1  ;;  %v2221_v25 = vpop.f32.mrb[9].mxu1  ;;  %v1892_v1 = vld [vmem:[#allocation4 + $0x378] sm:$0xff] }
 0x773   : > { %1980 = vmatmul.mubr.f32.vlgmr.msra.gmra.mrb[2].mxu0 %v1552_v18  ;;  %v1886_v18 = vld [vmem:[#allocation4 + $0x348] sm:$0xff]  ;;  %v1891_v25 = vld [vmem:[#allocation4 + $0x370] sm:$0xff] }
 0x774   : > { %2456 = vmatpush1.bf16.msra.mxu0 %v2455_v19  ;;  %v2493_v57 = vpack.c.bf16 %v1888_v41, %v1886_v18  ;;  %v1890_v19 = vld [vmem:[#allocation4 + $0x368] sm:$0xff] }
 0x775   : > { %2458 = vmatprep.subr.bf16.mxu0 %v2457_v2  ;;  %v3777_v61 = vpop.f32.mrb[10].mxu1  ;;  %v2495_v2 = vpack.c.bf16 %v1887_v16, %v1885_v31  ;;  %v2497_v5 = vpack.c.bf16 %v1892_v1, %v1890_v19 }
 0x776   : > { %v2226_v40 = vpop.f32.mrb[11].mxu1 }
 0x777   : > { %v2503_v40 = vpack.c.bf16 %v1895_v28, %v1893_v33 }
 0x778   : > { %2460 = vmatpush1.bf16.msra.mxu0 %v2459_v54  ;;  %v2499_v54 = vpack.c.bf16 %v1891_v25, %v1889_v21 }
 0x779   : > { %2462 = vmatprep.subr.bf16.mxu0 %v2461_v24  ;;  %v1777_v53 = vpop.f32.mrb[12].mxu1  ;;  %v2501_v24 = vpack.c.bf16 %v1896_v20, %v1894_v32 }
 0x77a   : > { %2050 = vmatprep.mubr.f32.mxu0 %v1777_v53  ;;  %v2231_v22 = vpop.f32.mrb[13].mxu1  ;;  %v1904_v53 = vld [vmem:[#allocation4 + $0x3d8] sm:$0xff] }
 0x77b   : > { %v2509_v51 = vpack.c.bf16 %v1904_v53, %v1902_v47  ;;  %v1901_v22 = vld [vmem:[#allocation4 + $0x3c0] sm:$0xff] }
 0x77c   : > { %2464 = vmatpush1.bf16.msra.mxu0 %v2463_v44  ;;  %v2505_v44 = vpack.c.bf16 %v1900_v11, %v1898_v34 }
 0x77d   : > { %2466 = vmatprep.subr.bf16.mxu0 %v2465_v45  ;;  %v1897_v45 = vld [vmem:[#allocation4 + $0x3a0] sm:$0xff] }
 0x77e   : > { %v2507_v48 = vpack.c.bf16 %v1899_v46, %v1897_v45 }
 0x780   : > { %2468 = vmatpush1.bf16.msra.mxu0 %v2467_v52  ;;  %v1903_v52 = vld [vmem:[#allocation4 + $0x3d0] sm:$0xff] }
 0x781   : > { %2470 = vmatprep.subr.bf16.mxu0 %v2469_v27  ;;  %v1906_v27 = vld [vmem:[#allocation4 + $0x3e8] sm:$0xff]  ;;  %v2511_v37 = vpack.c.bf16 %v1903_v52, %v1901_v22 }
 0x782   : > { %v2513_v30 = vpack.c.bf16 %v1908_v56, %v1906_v27 }
 0x784   : > { %2472 = vmatpush1.bf16.msra.mxu0 %v2471_v38  ;;  %v1907_v38 = vld [vmem:[#allocation4 + $0x3f0] sm:$0xff] }
 0x785   : > { %2474 = vmatprep.subr.bf16.mxu0 %v2473_v43  ;;  %v2515_v43 = vpack.c.bf16 %v1907_v38, %v1905_v35 }
 0x788   : > { %2476 = vmatpush1.bf16.msra.mxu0 %v2475_v60 }
 0x789   : > { %2478 = vmatprep.subr.bf16.mxu0 %v2477_v62 }
 0x78c   : > { %2480 = vmatpush1.bf16.msra.mxu0 %v2479_v0 }
 0x78d   : > { %2482 = vmatprep.subr.bf16.mxu0 %v2481_v59 }
 0x790   : > { %2484 = vmatpush1.bf16.msra.mxu0 %v2483_v7 }
 0x791   : > { %2486 = vmatprep.subr.bf16.mxu0 %v2485_v50 }
 0x794   : > { %2488 = vmatpush1.bf16.msra.mxu0 %v2487_v14 }
 0x795   : > { %2490 = vmatprep.subr.bf16.mxu0 %v2489_v15 }
 0x798   : > { %2492 = vmatpush1.bf16.msra.mxu0 %v2491_v55 }
 0x799   : > { %2494 = vmatprep.subr.bf16.mxu0 %v2493_v57 }
 0x79c   : > { %2496 = vmatpush1.bf16.msra.mxu0 %v2495_v2 }
 0x79d   : > { %2498 = vmatprep.subr.bf16.mxu0 %v2497_v5 }
 0x7a0   : > { %2500 = vmatpush1.bf16.msra.mxu0 %v2499_v54 }
 0x7a1   : > { %2502 = vmatprep.subr.bf16.mxu0 %v2501_v24 }
 0x7a4   : > { %2504 = vmatpush1.bf16.msra.mxu0 %v2503_v40 }
 0x7a5   : > { %2506 = vmatprep.subr.bf16.mxu0 %v2505_v44 }
 0x7a8   : > { %2508 = vmatpush1.bf16.msra.mxu0 %v2507_v48 }
 0x7a9   : > { %2510 = vmatprep.subr.bf16.mxu0 %v2509_v51 }
 0x7ac   : > { %2512 = vmatpush1.bf16.msra.mxu0 %v2511_v37 }
 0x7ad   : > { %2514 = vmatprep.subr.bf16.mxu0 %v2513_v30 }
 0x7b0   : > { %2516 = vmatpush1.bf16.msra.mxu0 %v2515_v43 }
 0x7b3   : > { %2051 = vmatmul.mubr.f32.vlgmr.msra.gmra.mrb[2].mxu0 %v3777_v61 }
 0x886   : > { %v2052_v26 = vpop.f32.mrb[2].mxu0 }
 0x887   : > { %v2517_v36 = vadd.f32 %v2052_v26, %v1913_v9  ;;  %v2054_v58 = vpop.f32.mrb[3].mxu0 }
 0x888   : > { %v2518_v60 = vadd.f32 %v2054_v58, %v1913_v9 }
 0x88a   : > { %v2059_v62 = vcombine.low %v2517_v36, %v2518_v60 }
 0x88c   : > { %2061 = vst [vmem:[%s389_s12] sm:$0xff] %v2059_v62 }
 0x88d PF: > { %s22_s13 = sadd.s32 1, %s3127_s13  }
 0x88e   : > { %p19_p5 = scmp.ge.s32.totalorder %s22_s13, 4  }
 0x890   :  { %21 = sbr.rel (!%p19_p5) target bundleno = 2 (0x2), region = 102 }
 0x897   :  { %2083 = vsyncpa [#allocation3], 1 }
 0x898   :  { %2085 = vsyncpa [#allocation3 + $0x1], 1 }
 0x899   :  { %2086 = vsyncpa [#allocation5], 1 }

</bundles_post_ra>
